<compile_context>
chip_gen: v6e
topology: v6e:2x2x1
jax: 0.10.0
libtpu: 0.0.40
codegen_flags: <defaults>
</compile_context>

<pallas_src>
import functools

import jax
import jax.numpy as jnp
from jax import lax
from jax.experimental import pallas as pl
from jax.experimental.pallas import tpu as pltpu

EPS = 1e-5
EXPANSION = 4
LANE = 128


def _round_up(x, m):
    return ((x + m - 1) // m) * m


# ------------------------------ Pallas kernel -------------------------------

def _bottleneck_kernel(x_ref, w1_ref, b1_ref, w2_ref, b2_ref, w3_ref, b3_ref,
                       o_ref, pad_ref, *, H, W, b_tile):
    """Fused Bottleneck forward for b_tile images (one grid step).

    x_ref  : (b, H*W, Cin_p)          bf16  activations (channels padded to 128k)
    w1_ref : (Cin_p, Cmid_p)          bf16  1x1 conv, BN1 scale folded in
    w2_ref : (9, Cmid_p, Cmid_p)      bf16  3x3 conv taps, BN2 scale folded in
    w3_ref : (Cmid_p, Cout_p)         bf16  1x1 conv, BN3 scale folded in
    b*_ref : (1, C)                   f32   folded BN biases
    o_ref  : (b, H*W, Cout_p)         bf16
    pad_ref: (b, H+2, W2p, Cmid_p)    bf16  VMEM scratch: zero-halo for the 3x3
    """
    cmid = w1_ref.shape[1]
    M = H * W
    BM = b_tile * M

    # ---- conv1 (1x1) + bn1 + relu : one MXU GEMM, f32 accumulation ----
    x2d = x_ref[...].reshape(BM, x_ref.shape[-1])
    y1 = jnp.dot(x2d, w1_ref[...], preferred_element_type=jnp.float32)
    a1 = jnp.maximum(y1 + b1_ref[...], 0.0).astype(jnp.bfloat16)

    # ---- build the zero-halo in VMEM: zero only the 1-px border, then
    #      overwrite the interior.  Border is re-zeroed every step so the
    #      kernel is correct even when the parallel grid axis is split across
    #      TensorCores (a core may never see grid index 0).
    zrow = jnp.zeros((b_tile, 1, pad_ref.shape[2], cmid), pad_ref.dtype)
    zcol = jnp.zeros((b_tile, H + 2, 1, cmid), pad_ref.dtype)
    pad_ref[:, 0:1, :, :] = zrow
    pad_ref[:, H + 1:H + 2, :, :] = zrow
    pad_ref[:, :, 0:1, :] = zcol
    pad_ref[:, :, W + 1:W + 2, :] = zcol
    pad_ref[:, 1:H + 1, 1:W + 1, :] = a1.reshape(b_tile, H, W, cmid)

    # ---- conv2 (3x3) + bn2 + relu : 9 shifted-tap GEMMs, f32 accumulation
    #      (no im2col scratch; the MXU accumulates per tap). ----
    y2 = None
    for t in range(9):                                    # statically unrolled
        dy, dx = divmod(t, 3)
        tap = pad_ref[:, dy:dy + H, dx:dx + W, :].reshape(BM, cmid)
        d = jnp.dot(tap, w2_ref[t], preferred_element_type=jnp.float32)
        y2 = d if y2 is None else y2 + d
    a2 = jnp.maximum(y2 + b2_ref[...], 0.0).astype(jnp.bfloat16)

    # ---- conv3 (1x1) + bn3 + identity residual + relu (x re-read here) ----
    y3 = jnp.dot(a2, w3_ref[...], preferred_element_type=jnp.float32)
    res = x_ref[...].reshape(BM, x_ref.shape[-1]).astype(jnp.float32)
    out = jnp.maximum(y3 + b3_ref[...] + res, 0.0)
    o_ref[...] = out.astype(jnp.bfloat16).reshape(b_tile, M, o_ref.shape[-1])


# ------------------------------ module wrapper ------------------------------

def _fold_bn(gamma, beta, mean, var):
    scale = gamma / jnp.sqrt(var + EPS)
    bias = beta - mean * scale
    return scale, bias


def _pad_to(a, shape):
    return jnp.pad(a, [(0, t - s) for s, t in zip(a.shape, shape)])


def _pick_b_tile(N, M, Cin_p, Cmid_p, Cout_p, H, W2p, budget=10 * 1024 * 1024):
    """Images per grid step: largest divisor of N within a VMEM budget,
    keeping >=2 grid steps when possible so both v7x TensorCores stay busy."""
    best = 1
    for cand in range(1, N + 1):
        if N % cand:
            continue
        if N >= 2 and N // cand < 2:
            continue
        foot = (2 * cand * M * Cin_p * 2           # x, double-buffered, bf16
                + 2 * cand * M * Cout_p * 2        # out, double-buffered, bf16
                + cand * (H + 2) * W2p * Cmid_p * 2  # halo scratch
                + cand * M * Cmid_p * 8)           # f32 acc + bf16 a1/a2
        if foot <= budget:
            best = cand
    return best


def bottleneck_forward(x_nhwc, p):
    """Bottleneck forward pass (inference BN, stride=1, identity residual)."""
    N, H, W, Cin = x_nhwc.shape
    Cmid = p["w1"].shape[1]
    Cout = p["w3"].shape[1]
    assert Cin == Cout, "identity residual needs inplanes == planes*expansion"

    M = H * W
    Cin_p = _round_up(Cin, LANE)
    Cmid_p = _round_up(Cmid, LANE)
    Cout_p = _round_up(Cout, LANE)
    W2p = _round_up(W + 2, 8)          # sublane-aligned halo width

    # Fold BN (inference) into per-channel scale/bias in f32, fold the scale
    # into the conv weights in f32, then cast weights/activations to bf16.
    s1, b1 = _fold_bn(p["g1"], p["be1"], p["m1"], p["v1"])
    s2, b2 = _fold_bn(p["g2"], p["be2"], p["m2"], p["v2"])
    s3, b3 = _fold_bn(p["g3"], p["be3"], p["m3"], p["v3"])

    w1p = _pad_to(p["w1"] * s1[None, :], (Cin_p, Cmid_p)).astype(jnp.bfloat16)
    w2f = _pad_to(p["w2"] * s2[None, None, None, :], (3, 3, Cmid_p, Cmid_p))
    w2p = w2f.reshape(9, Cmid_p, Cmid_p).astype(jnp.bfloat16)   # tap-major
    w3p = _pad_to(p["w3"] * s3[None, :], (Cmid_p, Cout_p)).astype(jnp.bfloat16)
    b1p = _pad_to(b1.reshape(1, -1), (1, Cmid_p)).astype(jnp.float32)
    b2p = _pad_to(b2.reshape(1, -1), (1, Cmid_p)).astype(jnp.float32)
    b3p = _pad_to(b3.reshape(1, -1), (1, Cout_p)).astype(jnp.float32)

    x_p = _pad_to(x_nhwc, (N, H, W, Cin_p)).astype(jnp.bfloat16).reshape(N, M, Cin_p)

    b_tile = _pick_b_tile(N, M, Cin_p, Cmid_p, Cout_p, H, W2p)

    flops = 2 * N * M * (Cin_p * Cmid_p + 9 * Cmid_p * Cmid_p + Cmid_p * Cout_p)
    bytes_accessed = (x_p.size * 2 + w1p.size * 2 + w2p.size * 2 + w3p.size * 2
                      + (b1p.size + b2p.size + b3p.size) * 4
                      + N * M * Cout_p * 2)

    out = pl.pallas_call(
        functools.partial(_bottleneck_kernel, H=H, W=W, b_tile=b_tile),
        grid=(N // b_tile,),                         # b_tile images per step
        in_specs=[
            # streamed activations (tiled over the grid)
            pl.BlockSpec((b_tile, M, Cin_p), lambda n: (n, 0, 0)),
            # weights / biases: constant index_map -> stay resident in VMEM
            pl.BlockSpec((Cin_p, Cmid_p), lambda n: (0, 0)),
            pl.BlockSpec((1, Cmid_p), lambda n: (0, 0)),
            pl.BlockSpec((9, Cmid_p, Cmid_p), lambda n: (0, 0, 0)),
            pl.BlockSpec((1, Cmid_p), lambda n: (0, 0)),
            pl.BlockSpec((Cmid_p, Cout_p), lambda n: (0, 0)),
            pl.BlockSpec((1, Cout_p), lambda n: (0, 0)),
        ],
        out_specs=pl.BlockSpec((b_tile, M, Cout_p), lambda n: (n, 0, 0)),
        out_shape=jax.ShapeDtypeStruct((N, M, Cout_p), jnp.bfloat16),
        scratch_shapes=[
            pltpu.VMEM((b_tile, H + 2, W2p, Cmid_p), jnp.bfloat16),  # halo
        ],
        compiler_params=pltpu.CompilerParams(
            dimension_semantics=("parallel",),        # split images across TCs
            vmem_limit_bytes=64 * 1024 * 1024),
        cost_estimate=pl.CostEstimate(flops=flops, transcendentals=0,
                                      bytes_accessed=bytes_accessed),
    )(x_p, w1p, b1p, w2p, b2p, w3p, b3p)

    return out[:, :, :Cout].reshape(N, H, W, Cout)


# ------------------------------ references ----------------------------------

def bottleneck_ref_f32(x_nhwc, p):
    """Plain f32 reference (PyTorch semantics, inference BN)."""
    hi = lax.Precision.HIGHEST

    def bn(y, g, b, m, v):
        return (y - m) / jnp.sqrt(v + EPS) * g + b

    h = jnp.einsum("nhwi,io->nhwo", x_nhwc, p["w1"], precision=hi)
    h = jnp.maximum(bn(h, p["g1"], p["be1"], p["m1"], p["v1"]), 0.0)
    h = lax.conv_general_dilated(
        h, p["w2"], window_strides=(1, 1), padding=((1, 1), (1, 1)),
        dimension_numbers=("NHWC", "HWIO", "NHWC"), precision=hi)
    h = jnp.maximum(bn(h, p["g2"], p["be2"], p["m2"], p["v2"]), 0.0)
    h = jnp.einsum("nhwi,io->nhwo", h, p["w3"], precision=hi)
    h = bn(h, p["g3"], p["be3"], p["m3"], p["v3"])
    return jnp.maximum(h + x_nhwc, 0.0)


def bottleneck_ref_matched(x_nhwc, p):
    """Reference mirroring the kernel's bf16-operand / f32-accumulate math."""
    f32, bf16 = jnp.float32, jnp.bfloat16
    hi = lax.Precision.HIGHEST
    N, H, W, _ = x_nhwc.shape
    s1, b1 = _fold_bn(p["g1"], p["be1"], p["m1"], p["v1"])
    s2, b2 = _fold_bn(p["g2"], p["be2"], p["m2"], p["v2"])
    s3, b3 = _fold_bn(p["g3"], p["be3"], p["m3"], p["v3"])
    w1 = (p["w1"] * s1[None, :]).astype(bf16).astype(f32)
    w2 = (p["w2"] * s2[None, None, None, :]).astype(bf16).astype(f32)
    w3 = (p["w3"] * s3[None, :]).astype(bf16).astype(f32)
    xb = x_nhwc.astype(bf16).astype(f32)

    a1 = jnp.maximum(jnp.einsum("nhwi,io->nhwo", xb, w1, precision=hi) + b1, 0.0)
    a1 = a1.astype(bf16).astype(f32)
    a1p = jnp.pad(a1, ((0, 0), (1, 1), (1, 1), (0, 0)))
    y2 = sum(jnp.einsum("nhwi,io->nhwo", a1p[:, dy:dy + H, dx:dx + W, :],
                        w2[dy, dx], precision=hi)
             for dy in range(3) for dx in range(3))
    a2 = jnp.maximum(y2 + b2, 0.0).astype(bf16).astype(f32)
    y3 = jnp.einsum("nhwi,io->nhwo", a2, w3, precision=hi) + b3
    return jnp.maximum(y3 + xb, 0.0).astype(bf16).astype(f32)   # bf16 output


# --------------------------------- params -----------------------------------

def make_params(key, inplanes, planes):
    cout = planes * EXPANSION
    ks = jax.random.split(key, 16)
    return {
        # conv weights: 1x1 -> (Cin, Cout); 3x3 -> HWIO
        "w1": jax.random.normal(ks[0], (inplanes, planes), jnp.float32) * 0.1,
        "w2": jax.random.normal(ks[1], (3, 3, planes, planes), jnp.float32) * 0.1,
        "w3": jax.random.normal(ks[2], (planes, cout), jnp.float32) * 0.1,
        # bn1
        "g1": jax.random.uniform(ks[3], (planes,), jnp.float32, 0.5, 1.5),
        "be1": jax.random.normal(ks[4], (planes,), jnp.float32) * 0.1,
        "m1": jax.random.normal(ks[5], (planes,), jnp.float32) * 0.1,
        "v1": jax.random.uniform(ks[6], (planes,), jnp.float32, 0.5, 1.5),
        # bn2
        "g2": jax.random.uniform(ks[7], (planes,), jnp.float32, 0.5, 1.5),
        "be2": jax.random.normal(ks[8], (planes,), jnp.float32) * 0.1,
        "m2": jax.random.normal(ks[9], (planes,), jnp.float32) * 0.1,
        "v2": jax.random.uniform(ks[10], (planes,), jnp.float32, 0.5, 1.5),
        # bn3
        "g3": jax.random.uniform(ks[11], (cout,), jnp.float32, 0.5, 1.5),
        "be3": jax.random.normal(ks[12], (cout,), jnp.float32) * 0.1,
        "m3": jax.random.normal(ks[13], (cout,), jnp.float32) * 0.1,
        "v3": jax.random.uniform(ks[14], (cout,), jnp.float32, 0.5, 1.5),
    }


# ----------------------------------- main ------------------------------------

if __name__ == "__main__":
    configs = [
        # (N, inplanes, H, W, planes); inplanes == planes*EXPANSION (identity residual)
        (2, 16, 8, 8, 4),       # tiny smoke test
        (2, 256, 16, 16, 64),   # realistic ResNet-50 layer1 channel counts
    ]
    key = jax.random.PRNGKey(0)
    for (N, inplanes, H, W, planes) in configs:
        key, kx, kp = jax.random.split(key, 3)
        x_nchw = jax.random.normal(kx, (N, inplanes, H, W), jnp.float32)  # PyTorch NCHW
        x_nhwc = jnp.transpose(x_nchw, (0, 2, 3, 1))                      # kernel layout
        params = make_params(kp, inplanes, planes)

        out = jax.block_until_ready(bottleneck_forward(x_nhwc, params))
        assert out.shape == (N, H, W, planes * EXPANSION)
        out_f = out.astype(jnp.float32)

        ref_m = bottleneck_ref_matched(x_nhwc, params)   # same bf16/f32 numerics
        ref_f = bottleneck_ref_f32(x_nhwc, params)       # pure f32 semantics
        assert jnp.allclose(out_f, ref_m, atol=2e-2, rtol=2e-2), \
            f"mismatch vs precision-matched reference, config {(N, inplanes, H, W, planes)}"
        rel_l2 = jnp.linalg.norm(out_f - ref_f) / jnp.linalg.norm(ref_f)
        assert float(rel_l2) < 5e-2, \
            f"rel L2 error {float(rel_l2):.4f} vs f32 reference too large"

    print("KERNEL_OK")
</pallas_src>

<mosaic_0001>
module attributes {stable_mosaic.version = 11 : i64} {
  func.func @_bottleneck_kernel(%arg0: i32, %arg1: memref<1x64x128xbf16, #tpu.memory_space<vmem>>, %arg2: memref<128x128xbf16, #tpu.memory_space<vmem>>, %arg3: memref<1x128xf32, #tpu.memory_space<vmem>>, %arg4: memref<9x128x128xbf16, #tpu.memory_space<vmem>>, %arg5: memref<1x128xf32, #tpu.memory_space<vmem>>, %arg6: memref<128x128xbf16, #tpu.memory_space<vmem>>, %arg7: memref<1x128xf32, #tpu.memory_space<vmem>>, %arg8: memref<1x64x128xbf16, #tpu.memory_space<vmem>>, %arg9: memref<1x10x16x128xbf16, #tpu.memory_space<vmem>>) attributes {dimension_semantics = [#tpu.dimension_semantics<parallel>], iteration_bounds = array<i64: 2>, scalar_prefetch = 0 : i64, scratch_operands = 1 : i64, tpu.core_type = #tpu.core_type<tc>, window_params = [{transform_indices = @transform_0, window_bounds = array<i64: 1, 64, 128>}, {pipeline_mode = #tpu.pipeline_mode<synchronous>, transform_indices = @transform_1, window_bounds = array<i64: 128, 128>}, {pipeline_mode = #tpu.pipeline_mode<synchronous>, transform_indices = @transform_2, window_bounds = array<i64: 1, 128>}, {pipeline_mode = #tpu.pipeline_mode<synchronous>, transform_indices = @transform_3, window_bounds = array<i64: 9, 128, 128>}, {pipeline_mode = #tpu.pipeline_mode<synchronous>, transform_indices = @transform_4, window_bounds = array<i64: 1, 128>}, {pipeline_mode = #tpu.pipeline_mode<synchronous>, transform_indices = @transform_5, window_bounds = array<i64: 128, 128>}, {pipeline_mode = #tpu.pipeline_mode<synchronous>, transform_indices = @transform_6, window_bounds = array<i64: 1, 128>}, {transform_indices = @transform_7, window_bounds = array<i64: 1, 64, 128>}]} {
    %c0 = arith.constant 0 : index
    %c0_0 = arith.constant 0 : index
    %c0_1 = arith.constant 0 : index
    %0 = vector.load %arg1[%c0, %c0_0, %c0_1] : memref<1x64x128xbf16, #tpu.memory_space<vmem>>, vector<1x64x128xbf16>
    %1 = vector.shape_cast %0 : vector<1x64x128xbf16> to vector<64x128xbf16>
    %c0_2 = arith.constant 0 : index
    %c0_3 = arith.constant 0 : index
    %2 = vector.load %arg2[%c0_2, %c0_3] : memref<128x128xbf16, #tpu.memory_space<vmem>>, vector<128x128xbf16>
    %cst = arith.constant dense<0.000000e+00> : vector<64x128xf32>
    %3 = tpu.matmul %1, %2, %cst {dimension_numbers = #tpu.dot_dimension_numbers<[1], [0], [0], [1], [0, 0, 1, 1], [], []>} : vector<64x128xbf16>, vector<128x128xbf16>, vector<64x128xf32> -> vector<64x128xf32>
    %c0_4 = arith.constant 0 : index
    %c0_5 = arith.constant 0 : index
    %4 = vector.load %arg3[%c0_4, %c0_5] : memref<1x128xf32, #tpu.memory_space<vmem>>, vector<1x128xf32>
    %5 = vector.broadcast %4 : vector<1x128xf32> to vector<64x128xf32>
    %6 = arith.addf %3, %5 : vector<64x128xf32>
    %cst_6 = arith.constant 0.000000e+00 : f32
    %7 = vector.broadcast %cst_6 : f32 to vector<64x128xf32>
    %8 = arith.maximumf %6, %7 : vector<64x128xf32>
    %9 = arith.truncf %8 : vector<64x128xf32> to vector<64x128xbf16>
    %cst_7 = arith.constant 0.000000e+00 : bf16
    %10 = vector.broadcast %cst_7 : bf16 to vector<1x1x16x128xbf16>
    %cst_8 = arith.constant 0.000000e+00 : bf16
    %11 = vector.broadcast %cst_8 : bf16 to vector<1x10x1x128xbf16>
    %c0_9 = arith.constant 0 : index
    %c0_10 = arith.constant 0 : index
    %c0_11 = arith.constant 0 : index
    %c0_12 = arith.constant 0 : index
    %12 = vector.load %arg9[%c0_9, %c0_10, %c0_11, %c0_12] : memref<1x10x16x128xbf16, #tpu.memory_space<vmem>>, vector<1x1x16x128xbf16>
    tpu.vector_store %arg9[%c0_9, %c0_10, %c0_11, %c0_12], %10 {strides = array<i32>} : memref<1x10x16x128xbf16, #tpu.memory_space<vmem>>, vector<1x1x16x128xbf16>,
    %c0_13 = arith.constant 0 : index
    %c9 = arith.constant 9 : index
    %c0_14 = arith.constant 0 : index
    %c0_15 = arith.constant 0 : index
    %13 = vector.load %arg9[%c0_13, %c9, %c0_14, %c0_15] : memref<1x10x16x128xbf16, #tpu.memory_space<vmem>>, vector<1x1x16x128xbf16>
    tpu.vector_store %arg9[%c0_13, %c9, %c0_14, %c0_15], %10 {strides = array<i32>} : memref<1x10x16x128xbf16, #tpu.memory_space<vmem>>, vector<1x1x16x128xbf16>,
    %c0_16 = arith.constant 0 : index
    %c0_17 = arith.constant 0 : index
    %c0_18 = arith.constant 0 : index
    %c0_19 = arith.constant 0 : index
    %14 = vector.load %arg9[%c0_16, %c0_17, %c0_18, %c0_19] : memref<1x10x16x128xbf16, #tpu.memory_space<vmem>>, vector<1x10x1x128xbf16>
    tpu.vector_store %arg9[%c0_16, %c0_17, %c0_18, %c0_19], %11 {strides = array<i32>} : memref<1x10x16x128xbf16, #tpu.memory_space<vmem>>, vector<1x10x1x128xbf16>,
    %c0_20 = arith.constant 0 : index
    %c0_21 = arith.constant 0 : index
    %c9_22 = arith.constant 9 : index
    %c0_23 = arith.constant 0 : index
    %15 = vector.load %arg9[%c0_20, %c0_21, %c9_22, %c0_23] : memref<1x10x16x128xbf16, #tpu.memory_space<vmem>>, vector<1x10x1x128xbf16>
    tpu.vector_store %arg9[%c0_20, %c0_21, %c9_22, %c0_23], %11 {strides = array<i32>} : memref<1x10x16x128xbf16, #tpu.memory_space<vmem>>, vector<1x10x1x128xbf16>,
    %16 = vector.shape_cast %9 : vector<64x128xbf16> to vector<1x8x8x128xbf16>
    %c0_24 = arith.constant 0 : index
    %c1 = arith.constant 1 : index
    %c1_25 = arith.constant 1 : index
    %c0_26 = arith.constant 0 : index
    %17 = vector.load %arg9[%c0_24, %c1, %c1_25, %c0_26] : memref<1x10x16x128xbf16, #tpu.memory_space<vmem>>, vector<1x8x8x128xbf16>
    tpu.vector_store %arg9[%c0_24, %c1, %c1_25, %c0_26], %16 {strides = array<i32>} : memref<1x10x16x128xbf16, #tpu.memory_space<vmem>>, vector<1x8x8x128xbf16>,
    %c0_27 = arith.constant 0 : index
    %c0_28 = arith.constant 0 : index
    %c0_29 = arith.constant 0 : index
    %c0_30 = arith.constant 0 : index
    %18 = vector.load %arg9[%c0_27, %c0_28, %c0_29, %c0_30] : memref<1x10x16x128xbf16, #tpu.memory_space<vmem>>, vector<1x8x8x128xbf16>
    %19 = vector.shape_cast %18 : vector<1x8x8x128xbf16> to vector<64x128xbf16>
    %c0_31 = arith.constant 0 : index
    %c0_32 = arith.constant 0 : index
    %c0_33 = arith.constant 0 : index
    %20 = vector.load %arg4[%c0_31, %c0_32, %c0_33] : memref<9x128x128xbf16, #tpu.memory_space<vmem>>, vector<1x128x128xbf16>
    %21 = vector.shape_cast %20 : vector<1x128x128xbf16> to vector<128x128xbf16>
    %cst_34 = arith.constant dense<0.000000e+00> : vector<64x128xf32>
    %22 = tpu.matmul %19, %21, %cst_34 {dimension_numbers = #tpu.dot_dimension_numbers<[1], [0], [0], [1], [0, 0, 1, 1], [], []>} : vector<64x128xbf16>, vector<128x128xbf16>, vector<64x128xf32> -> vector<64x128xf32>
    %c0_35 = arith.constant 0 : index
    %c0_36 = arith.constant 0 : index
    %c1_37 = arith.constant 1 : index
    %c0_38 = arith.constant 0 : index
    %23 = vector.load %arg9[%c0_35, %c0_36, %c1_37, %c0_38] : memref<1x10x16x128xbf16, #tpu.memory_space<vmem>>, vector<1x8x8x128xbf16>
    %24 = vector.shape_cast %23 : vector<1x8x8x128xbf16> to vector<64x128xbf16>
    %c1_39 = arith.constant 1 : index
    %c0_40 = arith.constant 0 : index
    %c0_41 = arith.constant 0 : index
    %25 = vector.load %arg4[%c1_39, %c0_40, %c0_41] : memref<9x128x128xbf16, #tpu.memory_space<vmem>>, vector<1x128x128xbf16>
    %26 = vector.shape_cast %25 : vector<1x128x128xbf16> to vector<128x128xbf16>
    %cst_42 = arith.constant dense<0.000000e+00> : vector<64x128xf32>
    %27 = tpu.matmul %24, %26, %cst_42 {dimension_numbers = #tpu.dot_dimension_numbers<[1], [0], [0], [1], [0, 0, 1, 1], [], []>} : vector<64x128xbf16>, vector<128x128xbf16>, vector<64x128xf32> -> vector<64x128xf32>
    %28 = arith.addf %22, %27 : vector<64x128xf32>
    %c0_43 = arith.constant 0 : index
    %c0_44 = arith.constant 0 : index
    %c2 = arith.constant 2 : index
    %c0_45 = arith.constant 0 : index
    %29 = vector.load %arg9[%c0_43, %c0_44, %c2, %c0_45] : memref<1x10x16x128xbf16, #tpu.memory_space<vmem>>, vector<1x8x8x128xbf16>
    %30 = vector.shape_cast %29 : vector<1x8x8x128xbf16> to vector<64x128xbf16>
    %c2_46 = arith.constant 2 : index
    %c0_47 = arith.constant 0 : index
    %c0_48 = arith.constant 0 : index
    %31 = vector.load %arg4[%c2_46, %c0_47, %c0_48] : memref<9x128x128xbf16, #tpu.memory_space<vmem>>, vector<1x128x128xbf16>
    %32 = vector.shape_cast %31 : vector<1x128x128xbf16> to vector<128x128xbf16>
    %cst_49 = arith.constant dense<0.000000e+00> : vector<64x128xf32>
    %33 = tpu.matmul %30, %32, %cst_49 {dimension_numbers = #tpu.dot_dimension_numbers<[1], [0], [0], [1], [0, 0, 1, 1], [], []>} : vector<64x128xbf16>, vector<128x128xbf16>, vector<64x128xf32> -> vector<64x128xf32>
    %34 = arith.addf %28, %33 : vector<64x128xf32>
    %c0_50 = arith.constant 0 : index
    %c1_51 = arith.constant 1 : index
    %c0_52 = arith.constant 0 : index
    %c0_53 = arith.constant 0 : index
    %35 = vector.load %arg9[%c0_50, %c1_51, %c0_52, %c0_53] : memref<1x10x16x128xbf16, #tpu.memory_space<vmem>>, vector<1x8x8x128xbf16>
    %36 = vector.shape_cast %35 : vector<1x8x8x128xbf16> to vector<64x128xbf16>
    %c3 = arith.constant 3 : index
    %c0_54 = arith.constant 0 : index
    %c0_55 = arith.constant 0 : index
    %37 = vector.load %arg4[%c3, %c0_54, %c0_55] : memref<9x128x128xbf16, #tpu.memory_space<vmem>>, vector<1x128x128xbf16>
    %38 = vector.shape_cast %37 : vector<1x128x128xbf16> to vector<128x128xbf16>
    %cst_56 = arith.constant dense<0.000000e+00> : vector<64x128xf32>
    %39 = tpu.matmul %36, %38, %cst_56 {dimension_numbers = #tpu.dot_dimension_numbers<[1], [0], [0], [1], [0, 0, 1, 1], [], []>} : vector<64x128xbf16>, vector<128x128xbf16>, vector<64x128xf32> -> vector<64x128xf32>
    %40 = arith.addf %34, %39 : vector<64x128xf32>
    %c0_57 = arith.constant 0 : index
    %c1_58 = arith.constant 1 : index
    %c1_59 = arith.constant 1 : index
    %c0_60 = arith.constant 0 : index
    %41 = vector.load %arg9[%c0_57, %c1_58, %c1_59, %c0_60] : memref<1x10x16x128xbf16, #tpu.memory_space<vmem>>, vector<1x8x8x128xbf16>
    %42 = vector.shape_cast %41 : vector<1x8x8x128xbf16> to vector<64x128xbf16>
    %c4 = arith.constant 4 : index
    %c0_61 = arith.constant 0 : index
    %c0_62 = arith.constant 0 : index
    %43 = vector.load %arg4[%c4, %c0_61, %c0_62] : memref<9x128x128xbf16, #tpu.memory_space<vmem>>, vector<1x128x128xbf16>
    %44 = vector.shape_cast %43 : vector<1x128x128xbf16> to vector<128x128xbf16>
    %cst_63 = arith.constant dense<0.000000e+00> : vector<64x128xf32>
    %45 = tpu.matmul %42, %44, %cst_63 {dimension_numbers = #tpu.dot_dimension_numbers<[1], [0], [0], [1], [0, 0, 1, 1], [], []>} : vector<64x128xbf16>, vector<128x128xbf16>, vector<64x128xf32> -> vector<64x128xf32>
    %46 = arith.addf %40, %45 : vector<64x128xf32>
    %c0_64 = arith.constant 0 : index
    %c1_65 = arith.constant 1 : index
    %c2_66 = arith.constant 2 : index
    %c0_67 = arith.constant 0 : index
    %47 = vector.load %arg9[%c0_64, %c1_65, %c2_66, %c0_67] : memref<1x10x16x128xbf16, #tpu.memory_space<vmem>>, vector<1x8x8x128xbf16>
    %48 = vector.shape_cast %47 : vector<1x8x8x128xbf16> to vector<64x128xbf16>
    %c5 = arith.constant 5 : index
    %c0_68 = arith.constant 0 : index
    %c0_69 = arith.constant 0 : index
    %49 = vector.load %arg4[%c5, %c0_68, %c0_69] : memref<9x128x128xbf16, #tpu.memory_space<vmem>>, vector<1x128x128xbf16>
    %50 = vector.shape_cast %49 : vector<1x128x128xbf16> to vector<128x128xbf16>
    %cst_70 = arith.constant dense<0.000000e+00> : vector<64x128xf32>
    %51 = tpu.matmul %48, %50, %cst_70 {dimension_numbers = #tpu.dot_dimension_numbers<[1], [0], [0], [1], [0, 0, 1, 1], [], []>} : vector<64x128xbf16>, vector<128x128xbf16>, vector<64x128xf32> -> vector<64x128xf32>
    %52 = arith.addf %46, %51 : vector<64x128xf32>
    %c0_71 = arith.constant 0 : index
    %c2_72 = arith.constant 2 : index
    %c0_73 = arith.constant 0 : index
    %c0_74 = arith.constant 0 : index
    %53 = vector.load %arg9[%c0_71, %c2_72, %c0_73, %c0_74] : memref<1x10x16x128xbf16, #tpu.memory_space<vmem>>, vector<1x8x8x128xbf16>
    %54 = vector.shape_cast %53 : vector<1x8x8x128xbf16> to vector<64x128xbf16>
    %c6 = arith.constant 6 : index
    %c0_75 = arith.constant 0 : index
    %c0_76 = arith.constant 0 : index
    %55 = vector.load %arg4[%c6, %c0_75, %c0_76] : memref<9x128x128xbf16, #tpu.memory_space<vmem>>, vector<1x128x128xbf16>
    %56 = vector.shape_cast %55 : vector<1x128x128xbf16> to vector<128x128xbf16>
    %cst_77 = arith.constant dense<0.000000e+00> : vector<64x128xf32>
    %57 = tpu.matmul %54, %56, %cst_77 {dimension_numbers = #tpu.dot_dimension_numbers<[1], [0], [0], [1], [0, 0, 1, 1], [], []>} : vector<64x128xbf16>, vector<128x128xbf16>, vector<64x128xf32> -> vector<64x128xf32>
    %58 = arith.addf %52, %57 : vector<64x128xf32>
    %c0_78 = arith.constant 0 : index
    %c2_79 = arith.constant 2 : index
    %c1_80 = arith.constant 1 : index
    %c0_81 = arith.constant 0 : index
    %59 = vector.load %arg9[%c0_78, %c2_79, %c1_80, %c0_81] : memref<1x10x16x128xbf16, #tpu.memory_space<vmem>>, vector<1x8x8x128xbf16>
    %60 = vector.shape_cast %59 : vector<1x8x8x128xbf16> to vector<64x128xbf16>
    %c7 = arith.constant 7 : index
    %c0_82 = arith.constant 0 : index
    %c0_83 = arith.constant 0 : index
    %61 = vector.load %arg4[%c7, %c0_82, %c0_83] : memref<9x128x128xbf16, #tpu.memory_space<vmem>>, vector<1x128x128xbf16>
    %62 = vector.shape_cast %61 : vector<1x128x128xbf16> to vector<128x128xbf16>
    %cst_84 = arith.constant dense<0.000000e+00> : vector<64x128xf32>
    %63 = tpu.matmul %60, %62, %cst_84 {dimension_numbers = #tpu.dot_dimension_numbers<[1], [0], [0], [1], [0, 0, 1, 1], [], []>} : vector<64x128xbf16>, vector<128x128xbf16>, vector<64x128xf32> -> vector<64x128xf32>
    %64 = arith.addf %58, %63 : vector<64x128xf32>
    %c0_85 = arith.constant 0 : index
    %c2_86 = arith.constant 2 : index
    %c2_87 = arith.constant 2 : index
    %c0_88 = arith.constant 0 : index
    %65 = vector.load %arg9[%c0_85, %c2_86, %c2_87, %c0_88] : memref<1x10x16x128xbf16, #tpu.memory_space<vmem>>, vector<1x8x8x128xbf16>
    %66 = vector.shape_cast %65 : vector<1x8x8x128xbf16> to vector<64x128xbf16>
    %c8 = arith.constant 8 : index
    %c0_89 = arith.constant 0 : index
    %c0_90 = arith.constant 0 : index
    %67 = vector.load %arg4[%c8, %c0_89, %c0_90] : memref<9x128x128xbf16, #tpu.memory_space<vmem>>, vector<1x128x128xbf16>
    %68 = vector.shape_cast %67 : vector<1x128x128xbf16> to vector<128x128xbf16>
    %cst_91 = arith.constant dense<0.000000e+00> : vector<64x128xf32>
    %69 = tpu.matmul %66, %68, %cst_91 {dimension_numbers = #tpu.dot_dimension_numbers<[1], [0], [0], [1], [0, 0, 1, 1], [], []>} : vector<64x128xbf16>, vector<128x128xbf16>, vector<64x128xf32> -> vector<64x128xf32>
    %70 = arith.addf %64, %69 : vector<64x128xf32>
    %c0_92 = arith.constant 0 : index
    %c0_93 = arith.constant 0 : index
    %71 = vector.load %arg5[%c0_92, %c0_93] : memref<1x128xf32, #tpu.memory_space<vmem>>, vector<1x128xf32>
    %72 = vector.broadcast %71 : vector<1x128xf32> to vector<64x128xf32>
    %73 = arith.addf %70, %72 : vector<64x128xf32>
    %cst_94 = arith.constant 0.000000e+00 : f32
    %74 = vector.broadcast %cst_94 : f32 to vector<64x128xf32>
    %75 = arith.maximumf %73, %74 : vector<64x128xf32>
    %76 = arith.truncf %75 : vector<64x128xf32> to vector<64x128xbf16>
    %c0_95 = arith.constant 0 : index
    %c0_96 = arith.constant 0 : index
    %77 = vector.load %arg6[%c0_95, %c0_96] : memref<128x128xbf16, #tpu.memory_space<vmem>>, vector<128x128xbf16>
    %cst_97 = arith.constant dense<0.000000e+00> : vector<64x128xf32>
    %78 = tpu.matmul %76, %77, %cst_97 {dimension_numbers = #tpu.dot_dimension_numbers<[1], [0], [0], [1], [0, 0, 1, 1], [], []>} : vector<64x128xbf16>, vector<128x128xbf16>, vector<64x128xf32> -> vector<64x128xf32>
    %c0_98 = arith.constant 0 : index
    %c0_99 = arith.constant 0 : index
    %c0_100 = arith.constant 0 : index
    %79 = vector.load %arg1[%c0_98, %c0_99, %c0_100] : memref<1x64x128xbf16, #tpu.memory_space<vmem>>, vector<1x64x128xbf16>
    %80 = vector.shape_cast %79 : vector<1x64x128xbf16> to vector<64x128xbf16>
    %81 = arith.extf %80 : vector<64x128xbf16> to vector<64x128xf32>
    %c0_101 = arith.constant 0 : index
    %c0_102 = arith.constant 0 : index
    %82 = vector.load %arg7[%c0_101, %c0_102] : memref<1x128xf32, #tpu.memory_space<vmem>>, vector<1x128xf32>
    %83 = vector.broadcast %82 : vector<1x128xf32> to vector<64x128xf32>
    %84 = arith.addf %78, %83 : vector<64x128xf32>
    %85 = arith.addf %84, %81 : vector<64x128xf32>
    %cst_103 = arith.constant 0.000000e+00 : f32
    %86 = vector.broadcast %cst_103 : f32 to vector<64x128xf32>
    %87 = arith.maximumf %85, %86 : vector<64x128xf32>
    %88 = arith.truncf %87 : vector<64x128xf32> to vector<64x128xbf16>
    %89 = vector.shape_cast %88 : vector<64x128xbf16> to vector<1x64x128xbf16>
    %c0_104 = arith.constant 0 : index
    %c0_105 = arith.constant 0 : index
    %c0_106 = arith.constant 0 : index
    %90 = vector.load %arg8[%c0_104, %c0_105, %c0_106] : memref<1x64x128xbf16, #tpu.memory_space<vmem>>, vector<1x64x128xbf16>
    tpu.vector_store %arg8[%c0_104, %c0_105, %c0_106], %89 {strides = array<i32>} : memref<1x64x128xbf16, #tpu.memory_space<vmem>>, vector<1x64x128xbf16>,
    return
  }
  func.func @transform_0(%arg0: i32) -> (i32, i32, i32) {
    %c0_i32 = arith.constant 0 : i32
    %c0_i32_0 = arith.constant 0 : i32
    %c0_i32_1 = arith.constant 0 : i32
    return %arg0, %c0_i32, %c0_i32_0 : i32, i32, i32
  }
  func.func @transform_1(%arg0: i32) -> (i32, i32) {
    %c0_i32 = arith.constant 0 : i32
    %c0_i32_0 = arith.constant 0 : i32
    %c0_i32_1 = arith.constant 0 : i32
    return %c0_i32, %c0_i32_0 : i32, i32
  }
  func.func @transform_2(%arg0: i32) -> (i32, i32) {
    %c0_i32 = arith.constant 0 : i32
    %c0_i32_0 = arith.constant 0 : i32
    %c0_i32_1 = arith.constant 0 : i32
    return %c0_i32, %c0_i32_0 : i32, i32
  }
  func.func @transform_3(%arg0: i32) -> (i32, i32, i32) {
    %c0_i32 = arith.constant 0 : i32
    %c0_i32_0 = arith.constant 0 : i32
    %c0_i32_1 = arith.constant 0 : i32
    %c0_i32_2 = arith.constant 0 : i32
    return %c0_i32, %c0_i32_0, %c0_i32_1 : i32, i32, i32
  }
  func.func @transform_4(%arg0: i32) -> (i32, i32) {
    %c0_i32 = arith.constant 0 : i32
    %c0_i32_0 = arith.constant 0 : i32
    %c0_i32_1 = arith.constant 0 : i32
    return %c0_i32, %c0_i32_0 : i32, i32
  }
  func.func @transform_5(%arg0: i32) -> (i32, i32) {
    %c0_i32 = arith.constant 0 : i32
    %c0_i32_0 = arith.constant 0 : i32
    %c0_i32_1 = arith.constant 0 : i32
    return %c0_i32, %c0_i32_0 : i32, i32
  }
  func.func @transform_6(%arg0: i32) -> (i32, i32) {
    %c0_i32 = arith.constant 0 : i32
    %c0_i32_0 = arith.constant 0 : i32
    %c0_i32_1 = arith.constant 0 : i32
    return %c0_i32, %c0_i32_0 : i32, i32
  }
  func.func @transform_7(%arg0: i32) -> (i32, i32, i32) {
    %c0_i32 = arith.constant 0 : i32
    %c0_i32_0 = arith.constant 0 : i32
    %c0_i32_1 = arith.constant 0 : i32
    return %arg0, %c0_i32, %c0_i32_0 : i32, i32, i32
  }
}

</mosaic_0001>

<bundles_post_ra>
// kernel: tpu_custom_call.1
= control target key start
LH: loop header
LB: loop body
LE: loop exit
PB: predicated region body
PF: predicated region fallthrough
CT: control target
= control target key end

     0   :  { %s4771_s0 = inlined_call_operand.hbm [shape: bf16[2,64,128], index: 0, kind: input, shape index: {}]   ;;  %s4772_s1 = inlined_call_operand.hbm [shape: bf16[128,128], index: 1, kind: input, shape index: {}]   ;;  %s4773_s2 = inlined_call_operand.vmem [shape: f32[1,128], index: 2, kind: input, shape index: {}]   ;;  %s4774_s3 = inlined_call_operand.hbm [shape: bf16[9,128,128], index: 3, kind: input, shape index: {}]   ;;  %s4775_s4 = inlined_call_operand.vmem [shape: f32[1,128], index: 4, kind: input, shape index: {}]   ;;  %s4776_s5 = inlined_call_operand.hbm [shape: bf16[128,128], index: 5, kind: input, shape index: {}]   ;;  %s4777_s6 = inlined_call_operand.vmem [shape: f32[1,128], index: 6, kind: input, shape index: {}]   ;;  %s4778_s7 = inlined_call_operand.hbm [shape: bf16[2,64,128], index: 7, kind: output, shape index: {}]  }
   0x1   :  { %4785 = sst [smem:[#allocation21_spill]] %s4772_s1 }
   0x2   :  { %12 = vsyncpa [#allocation4], 0 }
   0x3   :  { %14 = vsyncpa [#allocation4 + $0x1], 0 }
   0x4   :  { %15 = vsyncpa [#allocation7], 0 }
   0x5   :  { %16 = vsyncpa [#allocation10], 0 }
   0x6   :  { %17 = vsyncpa [#allocation5], 0 }
   0x7   :  { %19 = vsyncpa [#allocation5 + $0x1], 0  ;;  %s4141_s24 = smov 0   ;;  %s4143_s25 = smov 0  }
   0x8   :  { %s4145_s26 = smov 0   ;;  %s4147_s27 = smov 0  }
   0x9 LB: > { %s4162_s28 = sadd.s32 4294967295, %s4089_s27   ;;  %s3062_s29 = sadd.s32 4294967294, %s4089_s27   ;;  %s4089_s27 = sphi %s4147_s27, %s4827_s27   ;;  %s4085_s26 = sphi %s4145_s26, %s4826_s26   ;;  %s4081_s25 = sphi %s4143_s25, %s4825_s25   ;;  %s4077_s24 = sphi %s4141_s24, %s4824_s24  }
   0xa   : > { %p45_p0 = scmp.ne.s32.totalorder %s4081_s25, %s4077_s24  ;;  %p4779_p1 = scmp.eq.s32.totalorder %s4162_s28, 0 }
   0xb   : > { %p195_p2 = scmp.eq.s32.totalorder %s4162_s28, 1  ;;  %p201_p3 = scmp.eq.s32.totalorder %s3062_s29, 1 }
   0xc   : > { %p4171_p4 = por %p4779_p1, %p45_p0  ;;  %p3063_p5 = scmp.ge.s32.totalorder %s4089_s27, 1 }
   0xd   : > { %p4176_p6 = por %p201_p3, %p45_p0  ;;  %p208_p7 = scmp.lt.s32.totalorder %s4089_s27, 3 }
   0xe   : > { %s4786_s30 = scalar_select %p4171_p4, 1, 0 }
   0xf   : > { %s4787_s8 = scalar_select %p4176_p6, 1, 0 }
  0x10   : > { %p4181_p8 = pnand %p3063_p5, %p208_p7  ;;  %s4091_s10 = smov [#allocation6]  }
  0x11   : > { %s220_s11 = sshll.u32 %s4091_s10, 4  ;;  %s4092_s13 = smov [#allocation8]   ;;  %s221_s11 = int_to_ptr.vmem [resolvable:$true] %s220_s11 }
  0x12   : > { %s4788_s9 = scalar_select %p4181_p8, 1, 0 }
  0x13   : > { %p3741_p9 = pneg %p4181_p8  ;;  %s236_s14 = sshll.u32 %s4092_s13, 4  ;;  %s237_s14 = int_to_ptr.vmem [resolvable:$true] %s236_s14 }
  0x14   : > { %s4093_s15 = smov [#allocation9]   ;;  %s3922_s17 = scalar_lea.vmem %s221_s11, 1024 }
  0x15   : > { %p4190_p11 = pnand %p3741_p9, %p4779_p1  ;;  %s252_s16 = sshll.u32 %s4093_s15, 4  ;;  %s253_s16 = int_to_ptr.vmem [resolvable:$true] %s252_s16 }
  0x16   : > { %p3923_p13 = scmp.ne.s32.totalorder %s221_s11, %s3922_s17  ;;  %p3930_p5 = scmp.lt.s32.totalorder %s221_s11, %s221_s11 }
  0x17   : > { %p3913_p12 = pneg %p4190_p11  ;;  %p3931_p7 = scmp.lt.s32.totalorder %s3922_s17, %s3922_s17 }
  0x19   : > { %p3925_p0 = pnand %p3923_p13, %p3913_p12  ;;  %p3932_p9 = por %p3931_p7, %p3930_p5 }
  0x1b   : > { %p3926_p3 = pneg %p3925_p0 }
  0x1d   : > { %p3933_p10 = pnand %p3932_p9, %p3926_p3 }
  0x1f   : > { %3936 = shalt.err (!%p3933_p10)
}
  0x20   : > { %s4780_s18 = smov 64   ;;  %s4781_s19 = smov 4  }
  0x21   : > { %s4790_s1 = sld [smem:[#allocation21_spill]]  ;;  %s3948_s22 = scalar_lea.vmem %s237_s14, 9216 }
  0x22   : > { %p3949_p13 = scmp.ne.s32.totalorder %s237_s14, %s3948_s22  ;;  %p3956_p3 = scmp.lt.s32.totalorder %s237_s14, %s237_s14 }
  0x23   : > { %p3957_p10 = scmp.lt.s32.totalorder %s3948_s22, %s3948_s22 }
  0x24   : > { %p3951_p0 = pnand %p3949_p13, %p3913_p12 }
  0x25   : > { %p3958_p7 = por %p3957_p10, %p3956_p3 }
  0x26   : > { %p3952_p5 = pneg %p3951_p0 }
  0x27   : > { %3744 = dma.hbm_to_vmem [thread:$0]  (!%p4190_p11), %s4790_s1, 1024, %s221_s11, [#allocation7], %s4780_s18, %s4780_s18, %s4781_s19  }
  0x28   : > { %p3959_p9 = pnand %p3958_p7, %p3952_p5 }
  0x2a   : > { %3962 = shalt.err (!%p3959_p9)
}
  0x2b   : > { %3747 = dma.hbm_to_vmem [thread:$0]  (!%p4190_p11), %s4774_s3, 9216, %s237_s14, [#allocation7], %s4780_s18, %s4780_s18, %s4781_s19  }
  0x2c   : > { %s3974_s10 = scalar_lea.vmem %s253_s16, 1024  ;;  %p3982_p3 = scmp.lt.s32.totalorder %s253_s16, %s253_s16 }
  0x2d   : > { %p3975_p1 = scmp.ne.s32.totalorder %s253_s16, %s3974_s10  ;;  %p3983_p5 = scmp.lt.s32.totalorder %s3974_s10, %s3974_s10 }
  0x2f   : > { %p3977_p13 = pnand %p3975_p1, %p3913_p12  ;;  %p3984_p10 = por %p3983_p5, %p3982_p3 }
  0x31   : > { %p3978_p0 = pneg %p3977_p13 }
  0x33   : > { %p3985_p7 = pnand %p3984_p10, %p3978_p0 }
  0x35   : > { %3988 = shalt.err (!%p3985_p7)
}
  0x36   : > { %3750 = dma.hbm_to_vmem [thread:$0]  (!%p4190_p11), %s4776_s5, 1024, %s253_s16, [#allocation10], %s4780_s18, %s4780_s18, %s4781_s19  }
  0x37   : > { %s4230_s14 = sadd.s32 1, %s4089_s27   ;;  %s32_s15 = sadd.s32 1, %s4085_s26 }
  0x38   : > { %s29_s12 = ssub.s32 %s4089_s27, %s4230_s14  ;;  %p39_p12 = scmp.ne.s32.totalorder %s4085_s26, %s4081_s25 }
  0x39   : > { %p30_p1 = scmp.eq.s32.totalorder %s29_s12, 0  ;;  %p40_p9 = scmp.eq.s32.totalorder %s4089_s27, 0 }
  0x3a   : > { %p3762_p13 = scmp.lt.s32.totalorder %s4089_s27, 2  ;;  %p4244_p3 = por %p195_p2, %p39_p12 }
  0x3b   : > { %s4240_s17 = scalar_select %p30_p1, %s4085_s26, %s32_s15  }
  0x3c   : > { %p41_p0 = por %p40_p9, %p39_p12  ;;  %s269_s21 = sand.u32 1, %s4085_s26  }
  0x3d   : > { %s4791_s20 = scalar_select %p4244_p3, 1, 0 }
  0x3e   : > { %s3253_s22 = sshll.u32 %s4089_s27, 9  ;;  %s3068_s16 = sshll.u32 %s269_s21, 5 }
  0x3f   : > { %s4253_s10 = scalar_lea.hbm %s4771_s0, %s3253_s22  ;;  %s273_s11 = scalar_lea.vmem [#allocation3], %s3068_s16 }
  0x40   : > { %s280_s13 = sshll.u32 %s273_s11, 4  ;;  %p4255_p11 = pnand %p3762_p13, %p41_p0  ;;  %s4259_s13 = int_to_ptr.vmem [resolvable:$true] %s280_s13 }
  0x41   : > { %s4261_s15 = scalar_lea.sflag [#allocation4], %s269_s21  ;;  %s3989_s18 = scalar_lea.hbm %s4253_s10, 512 }
  0x42   : > { %p3990_p2 = scmp.ne.s32.totalorder %s4253_s10, %s3989_s18  ;;  %p3991_p5 = pneg %p4255_p11 }
  0x43   : > { %s3994_s16 = scalar_lea.hbm %s4771_s0, 1024  ;;  %p3995_p1 = scmp.lt.s32.totalorder %s4253_s10, %s4771_s0 }
  0x44   : > { %p3992_p10 = pnand %p3991_p5, %p3990_p2  ;;  %p3996_p12 = scmp.lt.s32.totalorder %s3994_s16, %s3989_s18 }
  0x46   : > { %p3993_p7 = pneg %p3992_p10  ;;  %p3997_p9 = por %p3996_p12, %p3995_p1 }
  0x48   : > { %p3998_p13 = pnand %p3997_p9, %p3993_p7 }
  0x4a   : > { %4001 = shalt.err (!%p3998_p13)
}
  0x4b   : > { %s4002_s21 = scalar_lea.vmem %s4259_s13, 512  ;;  %s4096_s19 = smov [#allocation3]  }
  0x4c   : > { %p4003_p0 = scmp.ne.s32.totalorder %s4259_s13, %s4002_s21  ;;  %s4007_s1 = sshll.u32 %s4096_s19, 4  ;;  %s4008_s1 = int_to_ptr.vmem [resolvable:$false] %s4007_s1 }
  0x4d   : > { %s4009_s22 = scalar_lea.vmem %s4008_s1, 1024  ;;  %p4010_p10 = scmp.lt.s32.totalorder %s4259_s13, %s4008_s1 }
  0x4e   : > { %p4005_p6 = pnand %p4003_p0, %p3991_p5  ;;  %p4011_p3 = scmp.lt.s32.totalorder %s4009_s22, %s4002_s21 }
  0x50   : > { %p4006_p2 = pneg %p4005_p6  ;;  %p4012_p4 = por %p4011_p3, %p4010_p10 }
  0x52   : > { %p4013_p8 = pnand %p4012_p4, %p4006_p2 }
  0x54   : > { %4016 = shalt.err (!%p4013_p8)
}
  0x55   : > { %s4793_s18 = smov 4   ;;  %s4794_s23 = smov 64  }
  0x56   : > { %3754 = dma.hbm_to_vmem [thread:$0]  (!%p4255_p11), %s4253_s10, 512, %s4259_s13, %s4261_s15, %s4794_s23, %s4794_s23, %s4793_s18  }
  0x57   : > { %p4795_p6 = scmp.ne.s32.totalorder %s4788_s9, 0 }
  0x59   : > { %292 = sbr.rel (%p4795_p6) target bundleno = 940 (0x3ac), region = 48 }
  0x5e   : > { %s4288_s19 = sand.u32 1, %s4081_s25   ;;  %p4796_p4 = scmp.ne.s32.totalorder %s4786_s30, 0 }
  0x5f   : > { %s3072_s1 = sshll.u32 %s4288_s19, 5  ;;  %s295_s16 = scalar_lea.sflag [#allocation4], %s4288_s19 }
  0x60   : > { %s4294_s12 = scalar_lea.vmem [#allocation3], %s3072_s1 }
  0x61   : > { %4060 = dma.done.wait (%p4796_p4), %s295_s16, 512  }
  0x62   : > { %4062 = vsyncadd (%p4796_p4), %s295_s16, 4294966784  ;;  %p4797_p8 = scmp.eq.s32.totalorder %s4162_s28, 0 }
  0x64   : > { %4064 = dma.done.wait (%p4797_p8), [#allocation7], 10240   ;;  %p4798_p3 = pmov %p4797_p8 }
  0x66   : > { %4066 = vsyncadd (%p4798_p3), [#allocation7], 4294957056  ;;  %p4799_p11 = pmov %p4798_p3 }
  0x67   : > { %p4800_p5 = pmov %p4798_p3 }
  0x68   : > { %4068 = dma.done.wait (%p4799_p11), [#allocation10], 1024  }
  0x69   : > { %4070 = vsyncadd (%p4800_p5), [#allocation10], 4294966272  ;;  %v3807_v0 = vld [vmem:[#allocation6 + $0x38] sm:$0xff]   ;;  %v3808_v1 = vld [vmem:[#allocation6 + $0x30] sm:$0xff]   ;;  %vm527_vm0 = vcmask 1040384   ;;  %v4097_v34 = vmov 0  }
  0x6a   : > { %3445 = vmatprep.subr.bf16.mxu0 %v3807_v0  ;;  %v3809_v2 = vld [vmem:[#allocation6 + $0x28] sm:$0xff]   ;;  %v3810_v3 = vld [vmem:[#allocation6 + $0x20] sm:$0xff]   ;;  %v3811_v5 = vld [vmem:[#allocation6 + $0x18] sm:$0xff]   ;;  %vm528_vm1 = vsmask.f32 256  ;;  %vm693_vm5 = vcmask 1043456  }
  0x6b   : > { %3446 = vmatpush3.bf16.msra.mxu0 %v3807_v0  ;;  %v3815_v4 = vld [vmem:[%s4294_s12] sm:$0xff]   ;;  %v3812_v6 = vld [vmem:[#allocation6 + $0x10] sm:$0xff]   ;;  %v3813_v7 = vld [vmem:[#allocation6 + $0x8] sm:$0xff]   ;;  %vm560_vm2 = vsmask.f32 7938  ;;  %vm1197_vm10 = vcmask 1042432  }
  0x6c   : > { %3447 = vmatprep.subr.bf16.mxu0 %v3808_v1  ;;  %3461 = vmatprep.mubr.bf16.mxu0 %v3815_v4  ;;  %v3814_v8 = vld [vmem:[#allocation6] sm:$0xff]   ;;  %v3819_v9 = vld [vmem:[#allocation8 + $0x38] sm:$0xff]   ;;  %v3816_v10 = vld [vmem:[%s4294_s12 + $0x8] sm:$0xff]   ;;  %522 = vst [vmem:[#allocation2] sm:$0xf] %v4097_v34  ;;  %vm1198_vm11 = vcmask 1046532  }
  0x6d   : > { %v3817_v11 = vld [vmem:[%s4294_s12 + $0x10] sm:$0xff]   ;;  %v3818_v12 = vld [vmem:[%s4294_s12 + $0x18] sm:$0xff]   ;;  %vm4312_vm3 = vmand %vm527_vm0, %vm528_vm1  ;;  %526 = vst [vmem:[#allocation2 + $0x4c] sm:$0xf] %v4097_v34  ;;  %vm775_vm7 = vsmask.f32 3328 }
  0x6e   : > { %v3820_v13 = vld [vmem:[#allocation8 + $0x30] sm:$0xff]   ;;  %v539_v15 = vld [vmem:[#allocation2 + $0x18] sm:$0x1]  ;;  %v571_v16 = vld [vmem:[#allocation2 + $0x1c] sm:$0x1]  ;;  %s340_s11 = scalar_lea.vmem [#allocation11], %s3072_s1 }
  0x6f   : > { %3448 = vmatpush3.bf16.msra.mxu0 %v3808_v1  ;;  %v540_v17 = vsel %vm4312_vm3, 0, %v539_v15  ;;  %vm4319_vm4 = vmand %vm527_vm0, %vm560_vm2  ;;  %v3821_v19 = vld [vmem:[#allocation8 + $0x28] sm:$0xff]   ;;  %v533_v21 = vld [vmem:[#allocation2 + $0x8] sm:$0x1]  ;;  %523 = vst [vmem:[#allocation2 + $0x4] sm:$0xf] %v4097_v34 }
  0x70   : > { %3449 = vmatprep.subr.bf16.mxu0 %v3809_v2  ;;  %541 = vst [vmem:[#allocation2 + $0x18] sm:$0x1] %v540_v17  ;;  %v572_v20 = vsel %vm4319_vm4, 0, %v571_v16  ;;  %v565_v22 = vld [vmem:[#allocation2 + $0xc] sm:$0x1]  ;;  %v534_v24 = vsel %vm4312_vm3, 0, %v533_v21  ;;  %vm4390_vm6 = vmand %vm693_vm5, %vm560_vm2 }
  0x71   : > { %v3822_v23 = vld [vmem:[#allocation8 + $0x78] sm:$0xff]   ;;  %573 = vst [vmem:[#allocation2 + $0x1c] sm:$0x1] %v572_v20  ;;  %v566_v25 = vsel %vm4319_vm4, 0, %v565_v22  ;;  %535 = vst [vmem:[#allocation2 + $0x8] sm:$0x1] %v534_v24 }
  0x72   : > { %567 = vst [vmem:[#allocation2 + $0xc] sm:$0x1] %v566_v25  ;;  %v542_v26 = vld [vmem:[#allocation2 + $0x20] sm:$0x1]  ;;  %v574_v27 = vld [vmem:[#allocation2 + $0x24] sm:$0x1]  ;;  %3469 = vmatprep.subr.bf16.mxu1 %v3822_v23  ;;  %vm4502_vm12 = vmor %vm1197_vm10, %vm1198_vm11 }
  0x73   : > { %3450 = vmatpush3.bf16.msra.mxu0 %v3809_v2  ;;  %v543_v28 = vsel %vm4312_vm3, 0, %v542_v26  ;;  %v575_v29 = vsel %vm4319_vm4, 0, %v574_v27  ;;  %3470 = vmatpush3.bf16.msra.mxu1 %v3822_v23  ;;  %v3823_v30 = vld [vmem:[#allocation8 + $0x20] sm:$0xff]   ;;  %v3824_v33 = vld [vmem:[#allocation8 + $0x70] sm:$0xff]   ;;  %525 = vst [vmem:[#allocation2 + $0x48] sm:$0xf] %v4097_v34 }
  0x74   : > { %3451 = vmatprep.subr.bf16.mxu0 %v3810_v3  ;;  %544 = vst [vmem:[#allocation2 + $0x20] sm:$0x1] %v543_v28  ;;  %576 = vst [vmem:[#allocation2 + $0x24] sm:$0x1] %v575_v29  ;;  %v536_v31 = vld [vmem:[#allocation2 + $0x10] sm:$0x1]  ;;  %3471 = vmatprep.subr.bf16.mxu1 %v3824_v33 }
  0x75   : > { %v568_v32 = vld [vmem:[#allocation2 + $0x14] sm:$0x1]  ;;  %v537_v35 = vsel %vm4312_vm3, 0, %v536_v31  ;;  %v3825_v37 = vld [vmem:[#allocation8 + $0x18] sm:$0xff]   ;;  %v3826_v40 = vld [vmem:[#allocation8 + $0x68] sm:$0xff]   ;;  %s2960_s21 = sshll.u32 %s340_s11, 4  ;;  %s4723_s21 = int_to_ptr.vmem [resolvable:$true] %s2960_s21 }
  0x76   : > { %v569_v36 = vsel %vm4319_vm4, 0, %v568_v32  ;;  %538 = vst [vmem:[#allocation2 + $0x10] sm:$0x1] %v537_v35  ;;  %v545_v38 = vld [vmem:[#allocation2 + $0x28] sm:$0x1]  ;;  %v3827_v46 = vld [vmem:[#allocation8 + $0x10] sm:$0xff]  }
  0x77   : > { %3452 = vmatpush3.bf16.msra.mxu0 %v3810_v3  ;;  %570 = vst [vmem:[#allocation2 + $0x14] sm:$0x1] %v569_v36  ;;  %3472 = vmatpush3.bf16.msra.mxu1 %v3824_v33  ;;  %v577_v39 = vld [vmem:[#allocation2 + $0x2c] sm:$0x1]  ;;  %v546_v41 = vsel %vm4312_vm3, 0, %v545_v38  ;;  %v3828_v50 = vld [vmem:[#allocation8 + $0x60] sm:$0xff]  }
  0x78   : > { %3453 = vmatprep.subr.bf16.mxu0 %v3811_v5  ;;  %v578_v42 = vsel %vm4319_vm4, 0, %v577_v39  ;;  %547 = vst [vmem:[#allocation2 + $0x28] sm:$0x1] %v546_v41  ;;  %3473 = vmatprep.subr.bf16.mxu1 %v3826_v40  ;;  %v530_v43 = vld [vmem:[#allocation2] sm:$0x1]  ;;  %v3829_v55 = vld [vmem:[#allocation8 + $0x8] sm:$0xff]  }
  0x79   : > { %579 = vst [vmem:[#allocation2 + $0x2c] sm:$0x1] %v578_v42  ;;  %v562_v44 = vld [vmem:[#allocation2 + $0x4] sm:$0x1]  ;;  %v551_v45 = vld [vmem:[#allocation2 + $0x38] sm:$0x1] }
  0x7a   : > { %v531_v47 = vsel %vm4312_vm3, 0, %v530_v43  ;;  %v563_v48 = vsel %vm4319_vm4, 0, %v562_v44  ;;  %v552_v49 = vsel %vm4312_vm3, 0, %v551_v45  ;;  %v548_v51 = vld [vmem:[#allocation2 + $0x30] sm:$0x1]  ;;  %v3830_v56 = vld [vmem:[#allocation8 + $0x58] sm:$0xff]  }
  0x7b   : > { %3454 = vmatpush3.bf16.msra.mxu0 %v3811_v5  ;;  %3474 = vmatpush3.bf16.msra.mxu1 %v3826_v40  ;;  %532 = vst [vmem:[#allocation2] sm:$0x1] %v531_v47  ;;  %564 = vst [vmem:[#allocation2 + $0x4] sm:$0x1] %v563_v48  ;;  %v583_v52 = vld [vmem:[#allocation2 + $0x3c] sm:$0x1] }
  0x7c   : > { %3455 = vmatprep.subr.bf16.mxu0 %v3812_v6  ;;  %553 = vst [vmem:[#allocation2 + $0x38] sm:$0x1] %v552_v49  ;;  %v549_v53 = vsel %vm4312_vm3, 0, %v548_v51  ;;  %3475 = vmatprep.subr.bf16.mxu1 %v3828_v50  ;;  %v584_v54 = vsel %vm4319_vm4, 0, %v583_v52  ;;  %v580_v57 = vld [vmem:[#allocation2 + $0x34] sm:$0x1] }
  0x7d   : > { %550 = vst [vmem:[#allocation2 + $0x30] sm:$0x1] %v549_v53  ;;  %585 = vst [vmem:[#allocation2 + $0x3c] sm:$0x1] %v584_v54  ;;  %v554_v58 = vld [vmem:[#allocation2 + $0x40] sm:$0x1] }
  0x7e   : > { %v581_v59 = vsel %vm4319_vm4, 0, %v580_v57  ;;  %v555_v60 = vsel %vm4312_vm3, 0, %v554_v58  ;;  %v586_v61 = vld [vmem:[#allocation2 + $0x44] sm:$0x1]  ;;  %v3831_v62 = vld [vmem:[#allocation8] sm:$0xff]   ;;  %v4357_v1 = vld [vmem:[#allocation8 + $0xf8] sm:$0xff]  }
  0x7f   : > { %3456 = vmatpush3.bf16.msra.mxu0 %v3812_v6  ;;  %3476 = vmatpush3.bf16.msra.mxu1 %v3828_v50  ;;  %582 = vst [vmem:[#allocation2 + $0x34] sm:$0x1] %v581_v59  ;;  %556 = vst [vmem:[#allocation2 + $0x40] sm:$0x1] %v555_v60  ;;  %v587_v63 = vsel %vm4319_vm4, 0, %v586_v61  ;;  %v3832_v0 = vld [vmem:[#allocation8 + $0x50] sm:$0xff]  }
  0x80   : > { %3457 = vmatprep.subr.bf16.mxu0 %v3813_v7  ;;  %3477 = vmatprep.subr.bf16.mxu1 %v3830_v56  ;;  %588 = vst [vmem:[#allocation2 + $0x44] sm:$0x1] %v587_v63  ;;  %v3835_v2 = vld [vmem:[#allocation8 + $0x48] sm:$0xff]   ;;  %v3838_v3 = vld [vmem:[#allocation8 + $0x40] sm:$0xff]   ;;  %v4360_v4 = vld [vmem:[#allocation8 + $0xb8] sm:$0xff]   ;;  %s3270_s22 = sshll.u32 %s4162_s28, 9 }
  0x81   : > { %v557_v5 = vld [vmem:[#allocation2 + $0x48] sm:$0x1]  ;;  %v707_v36 = vld [vmem:[#allocation2 + $0x18] sm:$0xf]  ;;  %v710_v40 = vld [vmem:[#allocation2 + $0x1c] sm:$0x1]  ;;  %s4728_s1 = scalar_lea.hbm %s4778_s7, %s3270_s22 }
  0x82   : > { %v558_v6 = vsel %vm4312_vm3, 0, %v557_v5  ;;  %v4383_v25 = vld [vmem:[#allocation2 + $0x4] sm:$0x1]  ;;  %v695_v50 = vld [vmem:[#allocation2 + $0x8] sm:$0xf]  ;;  %s2947_s16 = scalar_lea.sflag [#allocation5], %s4288_s19 }
  0x83   : > { %3458 = vmatpush3.bf16.msra.mxu0 %v3813_v7  ;;  %3478 = vmatpush3.bf16.msra.mxu1 %v3830_v56  ;;  %559 = vst [vmem:[#allocation2 + $0x48] sm:$0x1] %v558_v6  ;;  %v589_v7 = vld [vmem:[#allocation2 + $0x4c] sm:$0x1]  ;;  %v788_v27 = vshll.u32 %v4383_v25, 16  ;;  %p4821_p1 = scmp.ne.s32.totalorder %s4791_s20, 0 }
  0x84   : > { %3459 = vmatprep.subr.bf16.mxu0 %v3814_v8  ;;  %3479 = vmatprep.subr.bf16.mxu1 %v3832_v0  ;;  %v698_v51 = vld [vmem:[#allocation2 + $0xc] sm:$0x1]  ;;  %v713_v6 = vld [vmem:[#allocation2 + $0x20] sm:$0xf]  ;;  %vm776_vm8 = vsmask.f32 7440 }
  0x85   : > { %v4395_v45 = vrot.slane %v788_v27, 5  ;;  %vm4443_vm9 = vmor %vm775_vm7, %vm776_vm8  ;;  %s4098_s28 = smov [#allocation11]  }
  0x86   : > { %s4021_s30 = sshll.u32 %s4098_s28, 4  ;;  %s4022_s30 = int_to_ptr.vmem [resolvable:$false] %s4021_s30 }
  0x87   : > { %3460 = vmatpush3.bf16.msra.mxu0 %v3814_v8  ;;  %3480 = vmatpush3.bf16.msra.mxu1 %v3832_v0  ;;  %v590_v8 = vsel %vm4319_vm4, 0, %v589_v7  ;;  %v716_v7 = vld [vmem:[#allocation2 + $0x24] sm:$0x1]  ;;  %s4023_s9 = scalar_lea.vmem %s4022_s30, 1024  ;;  %p4024_p13 = scmp.lt.s32.totalorder %s4723_s21, %s4022_s30 }
  0x88   : > { %3493 = vmatprep.subr.bf16.mxu0 %v3819_v9  ;;  %3481 = vmatprep.subr.bf16.mxu1 %v3835_v2  ;;  %591 = vst [vmem:[#allocation2 + $0x4c] sm:$0x1] %v590_v8 }
  0x8a   : > { %3462 = vmatmul.mubr.bf16.vlgmr.msra.gmra.mxu0 %v3816_v10  ;;  %v4372_v10 = vld [vmem:[%s4773_s2] ss:$0 sm:$0xff] }
  0x8b   : > { %3465 = vmatprep.mubr.bf16.mxu0 %v3817_v11  ;;  %3494 = vmatpush3.bf16.msra.mxu0 %v3819_v9  ;;  %v4367_v9 = vld [vmem:[#allocation2] sm:$0xf] }
  0x8c   : > { %3495 = vmatprep.subr.bf16.mxu0 %v3820_v13  ;;  %3482 = vmatpush3.bf16.msra.mxu1 %v3835_v2 }
  0x8d   : > { %3483 = vmatprep.subr.bf16.mxu1 %v3838_v3 }
  0x8f   : > { %3496 = vmatpush3.bf16.msra.mxu0 %v3820_v13  ;;  %v782_v13 = vshll.u32 %v4367_v9, 16 }
  0x90   : > { %3497 = vmatprep.subr.bf16.mxu0 %v3821_v19  ;;  %3484 = vmatpush3.bf16.msra.mxu1 %v3838_v3 }
  0x91   : > { %3517 = vmatprep.subr.bf16.mxu1 %v4360_v4  ;;  %v4380_v21 = vrot.slane %v782_v13, 5 }
  0x92   : > { %3466 = vmatmul.mubr.bf16.gmra.mxu0 %v3818_v12  ;;  %v779_v12 = vshrl.u32 %v4367_v9, 16 }
  0x93   : > { %3498 = vmatpush3.bf16.msra.mxu0 %v3821_v19 }
  0x94   : > { %3499 = vmatprep.subr.bf16.mxu0 %v3823_v30  ;;  %v4378_v20 = vrot.slane %v779_v12, 4 }
  0x96   : > { %v785_v33 = vor.u32 %v4380_v21, %v4378_v20 }
  0x97   : > { %3500 = vmatpush3.bf16.msra.mxu0 %v3823_v30 }
  0x98   : > { %3501 = vmatprep.subr.bf16.mxu0 %v3825_v37 }
  0x9b   : > { %3502 = vmatpush3.bf16.msra.mxu0 %v3825_v37 }
  0x9c   : > { %3503 = vmatprep.subr.bf16.mxu0 %v3827_v46 }
  0x9f   : > { %3504 = vmatpush3.bf16.msra.mxu0 %v3827_v46 }
  0xa0   : > { %3505 = vmatprep.subr.bf16.mxu0 %v3829_v55 }
  0xa3   : > { %3506 = vmatpush3.bf16.msra.mxu0 %v3829_v55 }
  0xa4   : > { %3507 = vmatprep.subr.bf16.mxu0 %v3831_v62 }
  0xa7   : > { %3508 = vmatpush3.bf16.msra.mxu0 %v3831_v62 }
  0xa8   : > { %3541 = vmatprep.subr.bf16.mxu0 %v4357_v1 }
 0x14a   : > { %v3463_v11 = vpop.f32.mrf.mxu0 }
 0x14b   : > { %v488_v15 = vadd.f32 %v3463_v11, %v4372_v10 }
 0x14c   : > { %v479_v16 = vpop.f32.mrf.mxu0 }
 0x14d   : > { %v512_v17 = vmax.f32 %v488_v15, 0.0  ;;  %v480_v18 = vadd.f32 %v4372_v10, %v479_v16 }
 0x14e   : > { %v3464_v19 = vpop.f32.mrf.mxu0 }
 0x14f   : > { %v3256_v22 = vpack.c.bf16 %v512_v17, %v512_v17  ;;  %v510_v23 = vmax.f32 %v480_v18, 0.0  ;;  %v491_v24 = vadd.f32 %v3464_v19, %v4372_v10  ;;  %v701_v17 = vld [vmem:[#allocation2 + $0x10] sm:$0xf]  ;;  %v704_v18 = vld [vmem:[#allocation2 + $0x14] sm:$0x1] }
 0x150   : > { %v482_v26 = vpop.f32.mrf.mxu0 }
 0x151   : > { %v629_v28 = vshrl.u32 %v3256_v22, 16  ;;  %v3254_v29 = vpack.c.bf16 %v510_v23, %v510_v23  ;;  %v513_v30 = vmax.f32 %v491_v24, 0.0  ;;  %v483_v31 = vadd.f32 %v4372_v10, %v482_v26 }
 0x152   : > { %v3467_v32 = vpop.f32.mrf.mxu0  ;;  %v632_v35 = vshll.u32 %v3256_v22, 16 }
 0x153   : > { %v631_v34 = vrot.slane %v629_v28, 7  ;;  %v613_v37 = vshrl.u32 %v3254_v29, 16  ;;  %v3257_v38 = vpack.c.bf16 %v513_v30, %v513_v30  ;;  %v616_v41 = vshll.u32 %v3254_v29, 16 }
 0x154   : > { %v511_v42 = vmax.f32 %v483_v31, 0.0  ;;  %v504_v43 = vadd.f32 %v3467_v32, %v4372_v10  ;;  %v495_v44 = vpop.f32.mrf.mxu0 }
 0x155   : > { %v634_v46 = vor.u32 %v632_v35, %v631_v34  ;;  %v635_v47 = vrot.slane %v631_v34, 4  ;;  %v615_v48 = vrot.slane %v613_v37, 7  ;;  %v637_v49 = vshrl.u32 %v3257_v38, 16  ;;  %v734_v37 = vld [vmem:[#allocation2 + $0x3c] sm:$0x1] }
 0x156   : > { %v640_v52 = vshll.u32 %v3257_v38, 16  ;;  %v3255_v53 = vpack.c.bf16 %v511_v42, %v511_v42  ;;  %v516_v54 = vmax.f32 %v504_v43, 0.0  ;;  %v496_v55 = vadd.f32 %v4372_v10, %v495_v44  ;;  %v3468_v56 = vpop.f32.mrf.mxu0  ;;  %v719_v38 = vld [vmem:[#allocation2 + $0x28] sm:$0xf] }
 0x157   : > { %v708_v57 = vsel %vm4390_vm6, %v634_v46, %v707_v36  ;;  %v711_v58 = vsel %vm4312_vm3, %v635_v47, %v710_v40  ;;  %v618_v59 = vor.u32 %v616_v41, %v615_v48  ;;  %v619_v60 = vrot.slane %v615_v48, 4  ;;  %v731_v36 = vld [vmem:[#allocation2 + $0x38] sm:$0xf]  ;;  %v722_v48 = vld [vmem:[#allocation2 + $0x2c] sm:$0x1] }
 0x158   : > { %709 = vst [vmem:[#allocation2 + $0x18] sm:$0xf] %v708_v57  ;;  %712 = vst [vmem:[#allocation2 + $0x1c] sm:$0x1] %v711_v58  ;;  %v639_v61 = vrot.slane %v637_v49, 7  ;;  %v621_v62 = vshrl.u32 %v3255_v53, 16  ;;  %v3260_v0 = vpack.c.bf16 %v516_v54, %v516_v54  ;;  %v498_v2 = vpop.f32.mrf.mxu0  ;;  %v507_v11 = vadd.f32 %v3468_v56, %v4372_v10 }
 0x159   : > { %v624_v63 = vshll.u32 %v3255_v53, 16  ;;  %v696_v3 = vsel %vm4390_vm6, %v618_v59, %v695_v50  ;;  %v699_v5 = vsel %vm4312_vm3, %v619_v60, %v698_v51  ;;  %v514_v8 = vmax.f32 %v496_v55, 0.0  ;;  %v737_v54 = vld [vmem:[#allocation2 + $0x40] sm:$0xf] }
 0x15a   : > { %697 = vst [vmem:[#allocation2 + $0x8] sm:$0xf] %v696_v3  ;;  %700 = vst [vmem:[#allocation2 + $0xc] sm:$0x1] %v699_v5  ;;  %v642_v12 = vor.u32 %v640_v52, %v639_v61  ;;  %v643_v13 = vrot.slane %v639_v61, 4  ;;  %v623_v15 = vrot.slane %v621_v62, 7  ;;  %v499_v24 = vadd.f32 %v4372_v10, %v498_v2 }
 0x15b   : > { %v661_v16 = vshrl.u32 %v3260_v0, 16  ;;  %v664_v19 = vshll.u32 %v3260_v0, 16  ;;  %v3258_v22 = vpack.c.bf16 %v514_v8, %v514_v8  ;;  %v517_v23 = vmax.f32 %v507_v11, 0.0  ;;  %v725_v0 = vld [vmem:[#allocation2 + $0x30] sm:$0xf] }
 0x15c   : > { %v714_v26 = vsel %vm4390_vm6, %v642_v12, %v713_v6  ;;  %v717_v27 = vsel %vm4312_vm3, %v643_v13, %v716_v7  ;;  %v626_v28 = vor.u32 %v624_v63, %v623_v15  ;;  %v627_v29 = vrot.slane %v623_v15, 4  ;;  %v740_v63 = vld [vmem:[#allocation2 + $0x44] sm:$0x1] }
 0x15d   : > { %715 = vst [vmem:[#allocation2 + $0x20] sm:$0xf] %v714_v26  ;;  %718 = vst [vmem:[#allocation2 + $0x24] sm:$0x1] %v717_v27  ;;  %v663_v30 = vrot.slane %v661_v16, 7  ;;  %v645_v31 = vshrl.u32 %v3258_v22, 16  ;;  %v3261_v34 = vpack.c.bf16 %v517_v23, %v517_v23 }
 0x15e   : > { %v648_v32 = vshll.u32 %v3258_v22, 16  ;;  %v702_v35 = vsel %vm4390_vm6, %v626_v28, %v701_v17  ;;  %v705_v10 = vsel %vm4312_vm3, %v627_v29, %v704_v18  ;;  %v515_v40 = vmax.f32 %v499_v24, 0.0  ;;  %v3837_v28 = vld [vmem:[#allocation8 + $0xf0] sm:$0xff]   ;;  %v3897_v24 = vld [vmem:[#allocation8 + $0x228] sm:$0xff]  }
 0x15f   : > { %v4419_v41 = vrot.slane %v785_v33, 4  ;;  %703 = vst [vmem:[#allocation2 + $0x10] sm:$0xf] %v702_v35  ;;  %706 = vst [vmem:[#allocation2 + $0x14] sm:$0x1] %v705_v10  ;;  %v666_v42 = vor.u32 %v664_v19, %v663_v30  ;;  %v667_v43 = vrot.slane %v663_v30, 4 }
 0x160   : > { %v647_v44 = vrot.slane %v645_v31, 7  ;;  %v669_v46 = vshrl.u32 %v3261_v34, 16  ;;  %v4421_v47 = vld [vmem:[#allocation2 + $0x18] sm:$0xf]  ;;  %v672_v49 = vshll.u32 %v3261_v34, 16  ;;  %v3259_v50 = vpack.c.bf16 %v515_v40, %v515_v40 }
 0x161   : > { %v821_v51 = vshrl.u32 %v4421_v47, 16  ;;  %v824_v52 = vshll.u32 %v4421_v47, 16  ;;  %v732_v20 = vsel %vm4390_vm6, %v666_v42, %v731_v36  ;;  %v735_v21 = vsel %vm4312_vm3, %v667_v43, %v734_v37  ;;  %v744_v55 = vld [vmem:[#allocation2 + $0x8] sm:$0xf]  ;;  %v4429_v56 = vld [vmem:[#allocation2 + $0xc] sm:$0x1] }
 0x162   : > { %v650_v33 = vor.u32 %v648_v32, %v647_v44  ;;  %v651_v53 = vrot.slane %v647_v44, 4  ;;  %733 = vst [vmem:[#allocation2 + $0x38] sm:$0xf] %v732_v20  ;;  %736 = vst [vmem:[#allocation2 + $0x3c] sm:$0x1] %v735_v21  ;;  %v671_v57 = vrot.slane %v669_v46, 7  ;;  %v3110_v60 = vcombine.low %v4367_v9, %v744_v55 }
 0x163   : > { %v653_v58 = vshrl.u32 %v3259_v50, 16  ;;  %v656_v59 = vshll.u32 %v3259_v50, 16  ;;  %v793_v2 = vshrl.u32 %v744_v55, 16  ;;  %v796_v3 = vshll.u32 %v744_v55, 16  ;;  %v728_v9 = vld [vmem:[#allocation2 + $0x34] sm:$0x1] }
 0x164   : > { %v720_v61 = vsel %vm4390_vm6, %v650_v33, %v719_v38  ;;  %v723_v62 = vsel %vm4312_vm3, %v651_v53, %v722_v48  ;;  %v674_v5 = vor.u32 %v672_v49, %v671_v57  ;;  %v675_v6 = vrot.slane %v671_v57, 4  ;;  %3509 = vmatprep.mubr.bf16.mxu0 %v3110_v60  ;;  %v747_v8 = vld [vmem:[#allocation2 + $0x20] sm:$0xf]  ;;  %v4465_v14 = vld [vmem:[#allocation2 + $0x1c] sm:$0x1] }
 0x165   : > { %721 = vst [vmem:[#allocation2 + $0x28] sm:$0xf] %v720_v61  ;;  %724 = vst [vmem:[#allocation2 + $0x2c] sm:$0x1] %v723_v62  ;;  %v655_v7 = vrot.slane %v653_v58, 7  ;;  %v802_v11 = vshll.u32 %v4429_v56, 16  ;;  %v791_v29 = vsel %vm4443_vm9, %v4419_v41, %v4395_v45 }
 0x166   : > { %v835_v12 = vshrl.u32 %v747_v8, 16  ;;  %v838_v13 = vshll.u32 %v747_v8, 16  ;;  %v795_v15 = vrot.slane %v793_v2, 4  ;;  %v798_v16 = vrot.slane %v796_v3, 5  ;;  %v745_v23 = vld [vmem:[#allocation2 + $0x10] sm:$0xf] }
 0x167   : > { %v738_v17 = vsel %vm4390_vm6, %v674_v5, %v737_v54  ;;  %v741_v18 = vsel %vm4312_vm3, %v675_v6, %v740_v63  ;;  %v658_v19 = vor.u32 %v656_v59, %v655_v7  ;;  %v659_v22 = vrot.slane %v655_v7, 4  ;;  %v4447_v26 = vld [vmem:[#allocation2 + $0x14] sm:$0x1]  ;;  %v4461_v36 = vld [vmem:[#allocation2] sm:$0xe]  ;;  %v3840_v49 = vld [vmem:[#allocation8 + $0xe8] sm:$0xff]  }
 0x168   : > { %739 = vst [vmem:[#allocation2 + $0x40] sm:$0xf] %v738_v17  ;;  %742 = vst [vmem:[#allocation2 + $0x44] sm:$0x1] %v741_v18  ;;  %v3111_v27 = vcombine.low %v745_v23, %v4421_v47  ;;  %v799_v30 = vor.u32 %v798_v16, %v795_v15  ;;  %v1202_v31 = vrot.slane %v4383_v25, 5  ;;  %v4459_v35 = vrot.slane %v835_v12, 4 }
 0x169   : > { %v726_v32 = vsel %vm4390_vm6, %v658_v19, %v725_v0  ;;  %v729_v34 = vsel %vm4312_vm3, %v659_v22, %v728_v9  ;;  %v804_v10 = vrot.slane %v802_v11, 5  ;;  %v750_v38 = vld [vmem:[#allocation2 + $0x38] sm:$0xf]  ;;  %v807_v45 = vshrl.u32 %v745_v23, 16  ;;  %v3844_v2 = vld [vmem:[#allocation8 + $0xe0] sm:$0xff]   ;;  %v3851_v25 = vld [vmem:[#allocation8 + $0x98] sm:$0xff]  }
 0x16a   : > { %727 = vst [vmem:[#allocation2 + $0x30] sm:$0xf] %v726_v32  ;;  %730 = vst [vmem:[#allocation2 + $0x34] sm:$0x1] %v729_v34  ;;  %3510 = vmatmul.mubr.bf16.vlgmr.msra.gmra.mxu0 %v3111_v27  ;;  %v800_v37 = vrot.slane %v799_v30, 4  ;;  %v810_v40 = vshll.u32 %v745_v23, 16 }
 0x16b   : > { %v816_v41 = vshll.u32 %v4447_v26, 16  ;;  %3542 = vmatpush3.bf16.msra.mxu0 %v4357_v1  ;;  %v840_v39 = vrot.slane %v838_v13, 5  ;;  %v877_v42 = vshrl.u32 %v750_v38, 16  ;;  %v823_v43 = vrot.slane %v821_v51, 4  ;;  %v4473_v51 = vld [vmem:[#allocation2 + $0x24] sm:$0x1] }
 0x16c   : > { %v826_v44 = vrot.slane %v824_v52, 5  ;;  %3543 = vmatprep.subr.bf16.mxu0 %v3837_v28  ;;  %v748_v46 = vld [vmem:[#allocation2 + $0x28] sm:$0xf]  ;;  %v805_v48 = vsel %vm4443_vm9, %v800_v37, %v804_v10  ;;  %v880_v50 = vshll.u32 %v750_v38, 16  ;;  %v809_v20 = vrot.slane %v807_v45, 4 }
 0x16d   : > { %v812_v21 = vrot.slane %v810_v40, 5  ;;  %v849_v1 = vshrl.u32 %v748_v46, 16  ;;  %v852_v33 = vshll.u32 %v748_v46, 16  ;;  %v3112_v53 = vcombine.low %v747_v8, %v748_v46  ;;  %v4477_v3 = vld [vmem:[#allocation2 + $0x2c] sm:$0x1] }
 0x16e   : > { %v3098_v54 = vcombine.low %v791_v29, %v805_v48  ;;  %v818_v57 = vrot.slane %v816_v41, 5  ;;  %v827_v58 = vor.u32 %v826_v44, %v823_v43  ;;  %v3122_v47 = vrot.slane %v4461_v36, 9  ;;  %v4480_v6 = vld [vmem:[#allocation2 + $0x3c] sm:$0x1]  ;;  %v1174_v13 = vld [vmem:[#allocation2 + $0x8] sm:$0xe] }
 0x16f   : > { %v813_v55 = vor.u32 %v812_v21, %v809_v20  ;;  %v851_v52 = vrot.slane %v849_v1, 4  ;;  %v854_v59 = vrot.slane %v852_v33, 5  ;;  %3513 = vmatprep.mubr.bf16.mxu0 %v3112_v53  ;;  %3544 = vmatpush3.bf16.msra.mxu0 %v3837_v28  ;;  %v879_v60 = vrot.slane %v877_v42, 4  ;;  %v3843_v23 = vld [vmem:[#allocation2 + $0x8] ss:$8 sps:$4 sm:$0xff]   ;;  %v3848_v21 = vld [vmem:[#allocation8 + $0xd0] sm:$0xff]  }
 0x170   : > { %v830_v61 = vshll.u32 %v4465_v14, 16  ;;  %3485 = vmatprep.mubr.bf16.mxu1 %v3098_v54  ;;  %3545 = vmatprep.subr.bf16.mxu0 %v3840_v49  ;;  %v882_v62 = vrot.slane %v880_v50, 5  ;;  %v828_v0 = vrot.slane %v827_v58, 4  ;;  %v841_v5 = vor.u32 %v840_v39, %v4459_v35  ;;  %v3845_v35 = vld [vmem:[#allocation8 + $0xb0] sm:$0xff]   ;;  %v3846_v37 = vld [vmem:[#allocation8 + $0xd8] sm:$0xff]   ;;  %v3847_v50 = vld [vmem:[#allocation8 + $0xa8] sm:$0xff]  }
 0x171   : > { %v814_v63 = vrot.slane %v813_v55, 4  ;;  %v749_v7 = vld [vmem:[#allocation2 + $0x30] sm:$0xf]  ;;  %v844_v11 = vshll.u32 %v4473_v51, 16  ;;  %v855_v9 = vor.u32 %v854_v59, %v851_v52  ;;  %v858_v12 = vshll.u32 %v4477_v3, 16  ;;  %v3850_v52 = vld [vmem:[#allocation8 + $0xc8] sm:$0xff]  }
 0x172   : > { %v832_v8 = vrot.slane %v830_v61, 5  ;;  %v863_v15 = vshrl.u32 %v749_v7, 16  ;;  %v866_v16 = vshll.u32 %v749_v7, 16  ;;  %v3113_v17 = vcombine.low %v749_v7, %v750_v38  ;;  %v4486_v19 = vld [vmem:[#allocation2 + $0x34] sm:$0x1]  ;;  %v3907_v33 = vld [vmem:[#allocation9 + $0x18] sm:$0xff]  }
 0x173   : > { %v819_v18 = vsel %vm4443_vm9, %v814_v63, %v818_v57  ;;  %3546 = vmatpush3.bf16.msra.mxu0 %v3840_v49  ;;  %v842_v27 = vrot.slane %v841_v5, 4  ;;  %v846_v28 = vrot.slane %v844_v11, 5  ;;  %v856_v29 = vrot.slane %v855_v9, 4  ;;  %v3849_v57 = vld [vmem:[#allocation8 + $0xa0] sm:$0xff]   ;;  %v3854_v59 = vld [vmem:[#allocation2 + $0x18] ss:$8 sps:$4 sm:$0xff]  }
 0x174   : > { %v833_v22 = vsel %vm4443_vm9, %v828_v0, %v832_v8  ;;  %v865_v30 = vrot.slane %v863_v15, 4  ;;  %v868_v32 = vrot.slane %v866_v16, 5  ;;  %3514 = vmatmul.mubr.bf16.gmra.mxu0 %v3113_v17  ;;  %3547 = vmatprep.subr.bf16.mxu0 %v3844_v2  ;;  %v860_v10 = vrot.slane %v858_v12, 5  ;;  %v3852_v36 = vld [vmem:[#allocation8 + $0xc0] sm:$0xff]   ;;  %v3858_v63 = vld [vmem:[#allocation8 + $0x170] sm:$0xff]  }
 0x175   : > { %v3099_v34 = vcombine.low %v819_v18, %v833_v22  ;;  %v1206_v38 = vrot.slane %v4429_v56, 5  ;;  %3557 = vmatprep.mubr.bf16.mxu0 %v3843_v23  ;;  %v872_v45 = vshll.u32 %v4486_v19, 16  ;;  %v883_v40 = vor.u32 %v882_v62, %v879_v60  ;;  %v3856_v60 = vld [vmem:[#allocation8 + $0x88] sm:$0xff]   ;;  %v1558_v61 = vld [vmem:[#allocation2 + $0x10] sm:$0xf] }
 0x176   : > { %v886_v41 = vshll.u32 %v4480_v6, 16  ;;  %v847_v39 = vsel %vm4443_vm9, %v842_v27, %v846_v28  ;;  %v861_v42 = vsel %vm4443_vm9, %v856_v29, %v860_v10  ;;  %v869_v43 = vor.u32 %v868_v32, %v865_v30  ;;  %v3857_v62 = vld [vmem:[#allocation2 + $0x28] ss:$8 sps:$4 sm:$0xff]   ;;  %v4516_v5 = vld [vmem:[#allocation2 + $0x14] sm:$0x1]  ;;  %v3861_v10 = vld [vmem:[#allocation8 + $0x168] sm:$0xff]  }
 0x177   : > { %3486 = vmatmul.mubr.bf16.vlgmr.msra.gmra.mxu1 %v3099_v34  ;;  %v3123_v44 = vrot.slane %v1174_v13, 9  ;;  %3548 = vmatpush3.bf16.msra.mxu0 %v3844_v2  ;;  %v3100_v46 = vcombine.low %v847_v39, %v861_v42  ;;  %v874_v56 = vrot.slane %v872_v45, 5  ;;  %v884_v48 = vrot.slane %v883_v40, 4  ;;  %v1175_v0 = vld [vmem:[#allocation2 + $0x10] sm:$0xe] }
 0x178   : > { %3518 = vmatpush3.bf16.msra.mxu1 %v4360_v4  ;;  %v888_v49 = vrot.slane %v886_v41, 5  ;;  %3549 = vmatprep.subr.bf16.mxu0 %v3846_v37  ;;  %v870_v20 = vrot.slane %v869_v43, 4  ;;  %v1203_v53 = vsel %vm4502_vm12, %v3122_v47, %v1202_v31  ;;  %v3853_v31 = vld [vmem:[#allocation8 + $0x90] sm:$0xff]   ;;  %v3855_v47 = vld [vmem:[#allocation8 + $0x178] sm:$0xff]   ;;  %v1176_v2 = vld [vmem:[#allocation2 + $0x18] sm:$0xe] }
 0x179   : > { %3519 = vmatprep.subr.bf16.mxu1 %v3845_v35  ;;  %3489 = vmatprep.mubr.bf16.mxu1 %v3100_v46  ;;  %v1207_v54 = vsel %vm4502_vm12, %v3123_v44, %v1206_v38  ;;  %v1839_v7 = vld [vmem:[#allocation2 + $0x10] sm:$0xe]  ;;  %v1556_v8 = vld [vmem:[#allocation2 + $0x8] sm:$0xf]  ;;  %v4518_v11 = vld [vmem:[#allocation2 + $0xc] sm:$0x1] }
 0x17a   : > { %v889_v1 = vsel %vm4443_vm9, %v884_v48, %v888_v49  ;;  %v875_v4 = vsel %vm4443_vm9, %v870_v20, %v874_v56  ;;  %v3130_v58 = vcombine.low %v1203_v53, %v1207_v54  ;;  %v1838_v9 = vld [vmem:[#allocation2 + $0x8] sm:$0xe]  ;;  %v1587_v12 = vshrl.u32 %v1558_v61, 16  ;;  %v3859_v23 = vld [vmem:[#allocation8 + $0x80] sm:$0xff]   ;;  %v1180_v43 = vld [vmem:[#allocation2 + $0x38] sm:$0xe] }
 0x17b   : > { %3550 = vmatpush3.bf16.msra.mxu0 %v3846_v37  ;;  %v3101_v55 = vcombine.low %v875_v4, %v889_v1  ;;  %v1590_v13 = vshll.u32 %v1558_v61, 16  ;;  %v3167_v15 = vrot.slane %v1839_v7, 9  ;;  %v1868_v16 = vrot.slane %v4516_v5, 5  ;;  %v1178_v17 = vld [vmem:[#allocation2 + $0x28] sm:$0xe] }
 0x17c   : > { %3520 = vmatpush3.bf16.msra.mxu1 %v3845_v35  ;;  %3551 = vmatprep.subr.bf16.mxu0 %v3848_v21  ;;  %v1210_v18 = vrot.slane %v4447_v26, 5  ;;  %v1214_v22 = vrot.slane %v4465_v14, 5  ;;  %v1573_v27 = vshrl.u32 %v1556_v8, 16  ;;  %v1576_v28 = vshll.u32 %v1556_v8, 16  ;;  %v1177_v35 = vld [vmem:[#allocation2 + $0x20] sm:$0xe] }
 0x17d   : > { %3521 = vmatprep.subr.bf16.mxu1 %v3847_v50  ;;  %v3124_v29 = vrot.slane %v1175_v0, 9  ;;  %v3125_v30 = vrot.slane %v1176_v2, 9  ;;  %v3166_v32 = vrot.slane %v1838_v9, 9  ;;  %v1864_v34 = vrot.slane %v4518_v11, 5  ;;  %v3862_v14 = vld [vmem:[#allocation8 + $0x138] sm:$0xff]  }
 0x17e   : > { %v3127_v37 = vrot.slane %v1178_v17, 9  ;;  %v1222_v38 = vrot.slane %v4477_v3, 5  ;;  %v1589_v26 = vrot.slane %v1587_v12, 4  ;;  %v1592_v45 = vrot.slane %v1590_v13, 5  ;;  %v1179_v41 = vld [vmem:[#allocation2 + $0x30] sm:$0xe] }
 0x17f   : > { %3490 = vmatmul.mubr.bf16.gmra.mxu1 %v3101_v55  ;;  %3552 = vmatpush3.bf16.msra.mxu0 %v3848_v21  ;;  %v1869_v40 = vsel %vm4502_vm12, %v3167_v15, %v1868_v16  ;;  %v3126_v39 = vrot.slane %v1177_v35, 9  ;;  %v1218_v42 = vrot.slane %v4473_v51, 5  ;;  %v1575_v44 = vrot.slane %v1573_v27, 4  ;;  %v3860_v56 = vld [vmem:[#allocation2 + $0x38] ss:$8 sps:$4 sm:$0xff]   ;;  %v3863_v51 = vld [vmem:[#allocation8 + $0x160] sm:$0xff]  }
 0x180   : > { %3522 = vmatpush3.bf16.msra.mxu1 %v3847_v50  ;;  %3533 = vmatprep.mubr.bf16.mxu1 %v3130_v58  ;;  %v1578_v46 = vrot.slane %v1576_v28, 5  ;;  %v1211_v3 = vsel %vm4502_vm12, %v3124_v29, %v1210_v18  ;;  %v1865_v48 = vsel %vm4502_vm12, %v3166_v32, %v1864_v34  ;;  %v1215_v49 = vsel %vm4502_vm12, %v3125_v30, %v1214_v22  ;;  %v3864_v58 = vld [vmem:[#allocation8 + $0x130] sm:$0xff]   ;;  %v4544_v61 = vld [vmem:[#allocation2 + $0x1c] sm:$0x1]  ;;  %v4550_v2 = vld [vmem:[#allocation2 + $0x2c] sm:$0x1] }
 0x181   : > { %3523 = vmatprep.subr.bf16.mxu1 %v3849_v57  ;;  %3553 = vmatprep.subr.bf16.mxu0 %v3850_v52  ;;  %v3174_v50 = vcombine.low %v1865_v48, %v1869_v40  ;;  %v1223_v20 = vsel %vm4502_vm12, %v3127_v37, %v1222_v38  ;;  %v1593_v21 = vor.u32 %v1592_v45, %v1589_v26  ;;  %v3128_v1 = vrot.slane %v1179_v41, 9  ;;  %v4553_v12 = vld [vmem:[#allocation2 + $0x34] sm:$0x1]  ;;  %v1843_v13 = vld [vmem:[#allocation2 + $0x30] sm:$0xe]  ;;  %v3867_v17 = vld [vmem:[#allocation8 + $0x150] sm:$0xff]  }
 0x182   : > { %v1226_v4 = vrot.slane %v4486_v19, 5  ;;  %v3129_v53 = vrot.slane %v1180_v43, 9  ;;  %v1230_v54 = vrot.slane %v4480_v6, 5  ;;  %v3131_v55 = vcombine.low %v1211_v3, %v1215_v49  ;;  %v3866_v19 = vld [vmem:[#allocation8 + $0x128] sm:$0xff]   ;;  %v3868_v30 = vld [vmem:[#allocation8 + $0x120] sm:$0xff]  }
 0x183   : > { %3554 = vmatpush3.bf16.msra.mxu0 %v3850_v52  ;;  %v3865_v52 = vld [vmem:[#allocation8 + $0x158] sm:$0xff]   ;;  %v1582_v6 = vshll.u32 %v4518_v11, 16  ;;  %v1872_v22 = vrot.slane %v4544_v61, 5  ;;  %v1880_v28 = vrot.slane %v4550_v2, 5  ;;  %v3171_v34 = vrot.slane %v1843_v13, 9  ;;  %v3869_v37 = vld [vmem:[#allocation8 + $0x148] sm:$0xff]  }
 0x184   : > { %3524 = vmatpush3.bf16.msra.mxu1 %v3849_v57  ;;  %3555 = vmatprep.subr.bf16.mxu0 %v3852_v36  ;;  %v1219_v57 = vsel %vm4502_vm12, %v3126_v39, %v1218_v42  ;;  %v1231_v0 = vsel %vm4502_vm12, %v3129_v53, %v1230_v54  ;;  %v1884_v35 = vrot.slane %v4553_v12, 5  ;;  %v4566_v38 = vld [vmem:[#allocation2 + $0x38] sm:$0xe]  ;;  %v2219_v26 = vld [vmem:[#allocation2 + $0x10] sm:$0xf] }
 0x185   : > { %3525 = vmatprep.subr.bf16.mxu1 %v3851_v25  ;;  %v1584_v15 = vrot.slane %v1582_v6, 5  ;;  %v1562_v40 = vld [vmem:[#allocation2 + $0x20] sm:$0xf]  ;;  %v2221_v41 = vld [vmem:[#allocation2 + $0x18] sm:$0xf]  ;;  %v3172_v48 = vrot.slane %v4566_v38, 9 }
 0x186   : > { %v4580_v43 = vld [vmem:[#allocation2 + $0x40] sm:$0xe]  ;;  %v4584_v3 = vsel %vm4502_vm12, %v3171_v34, %v1884_v35  ;;  %v1560_v49 = vld [vmem:[#allocation2 + $0x18] sm:$0xf]  ;;  %v2253_v53 = vshll.u32 %v2221_v41, 16  ;;  %v3871_v54 = vld [vmem:[#allocation8 + $0x140] sm:$0xff]  }
 0x187   : > { %3556 = vmatpush3.bf16.msra.mxu0 %v3852_v36  ;;  %v1596_v36 = vshll.u32 %v4516_v5, 16  ;;  %v1842_v5 = vld [vmem:[#allocation2 + $0x28] sm:$0xe]  ;;  %v1570_v13 = vld [vmem:[#allocation2 + $0x40] sm:$0xf]  ;;  %v1610_v38 = vshll.u32 %v4544_v61, 16 }
 0x188   : > { %3526 = vmatpush3.bf16.msra.mxu1 %v3851_v25  ;;  %3589 = vmatprep.subr.bf16.mxu0 %v3855_v47  ;;  %v1579_v25 = vor.u32 %v1578_v46, %v1575_v44  ;;  %v3170_v27 = vrot.slane %v1842_v5, 9  ;;  %v1564_v44 = vld [vmem:[#allocation2 + $0x28] sm:$0xf]  ;;  %v1566_v46 = vld [vmem:[#allocation2 + $0x30] sm:$0xf] }
 0x189   : > { %3527 = vmatprep.subr.bf16.mxu1 %v3853_v31  ;;  %v1598_v8 = vrot.slane %v1596_v36, 5  ;;  %v3873_v6 = vld [vmem:[#allocation8 + $0x1f8] sm:$0xff]   ;;  %v1568_v5 = vld [vmem:[#allocation2 + $0x38] sm:$0xf] }
 0x18a   : > { %3558 = vmatmul.mubr.bf16.vlgmr.msra.gmra.mxu0 %v3854_v59  ;;  %v1841_v59 = vld [vmem:[#allocation2 + $0x20] sm:$0xe]  ;;  %v1580_v7 = vrot.slane %v1579_v25, 4  ;;  %v4578_v42 = vsel %vm4502_vm12, %v3170_v27, %v1880_v28  ;;  %v1657_v28 = vshrl.u32 %v1568_v5, 16 }
 0x18b   : > { %3561 = vmatprep.mubr.bf16.mxu0 %v3857_v62  ;;  %3590 = vmatpush3.bf16.msra.mxu0 %v3855_v47  ;;  %v4541_v47 = vld [vmem:[#allocation2 + $0x24] sm:$0x1]  ;;  %v1840_v62 = vld [vmem:[#allocation2 + $0x18] sm:$0xe]  ;;  %v3169_v9 = vrot.slane %v1841_v59, 9  ;;  %v1601_v59 = vshrl.u32 %v1560_v49, 16 }
 0x18c   : > { %3528 = vmatpush3.bf16.msra.mxu1 %v3853_v31  ;;  %3591 = vmatprep.subr.bf16.mxu0 %v3858_v63  ;;  %v3132_v31 = vcombine.low %v1219_v57, %v1223_v20  ;;  %v1876_v11 = vrot.slane %v4541_v47, 5  ;;  %v3168_v18 = vrot.slane %v1840_v62, 9  ;;  %v1585_v29 = vsel %vm4443_vm9, %v1580_v7, %v1584_v15  ;;  %v3872_v25 = vld [vmem:[#allocation8 + $0x110] sm:$0xff]   ;;  %v4594_v15 = vld [vmem:[#allocation2 + $0x14] sm:$0x1] }
 0x18d   : > { %3529 = vmatprep.subr.bf16.mxu1 %v3856_v60  ;;  %v2239_v20 = vshll.u32 %v2219_v26, 16  ;;  %v1632_v57 = vshll.u32 %v1564_v44, 16 }
 0x18e   : > { %v4563_v32 = vsel %vm4502_vm12, %v3169_v9, %v1876_v11  ;;  %v4570_v45 = vsel %vm4502_vm12, %v3168_v18, %v1872_v22  ;;  %v2255_v11 = vrot.slane %v2253_v53, 5 }
 0x18f   : > { %3592 = vmatpush3.bf16.msra.mxu0 %v3858_v63  ;;  %v1227_v63 = vsel %vm4502_vm12, %v3128_v1, %v1226_v4  ;;  %v3175_v39 = vcombine.low %v4570_v45, %v4563_v32  ;;  %v1618_v1 = vshll.u32 %v1562_v40, 16  ;;  %v2250_v4 = vshrl.u32 %v2221_v41, 16 }
 0x190   : > { %3530 = vmatpush3.bf16.msra.mxu1 %v3856_v60  ;;  %3593 = vmatprep.subr.bf16.mxu0 %v3861_v10  ;;  %v1594_v60 = vrot.slane %v1593_v21, 4  ;;  %v1615_v21 = vshrl.u32 %v1562_v40, 16  ;;  %v4601_v40 = vld [vmem:[#allocation2 + $0x1c] sm:$0x1]  ;;  %v2245_v41 = vshll.u32 %v4594_v15, 16 }
 0x191   : > { %3531 = vmatprep.subr.bf16.mxu1 %v3859_v23  ;;  %v2252_v9 = vrot.slane %v2250_v4, 4 }
 0x192   : > { %3562 = vmatmul.mubr.bf16.gmra.mxu0 %v3860_v56  ;;  %v1599_v16 = vsel %vm4443_vm9, %v1594_v60, %v1598_v8  ;;  %v3870_v56 = vld [vmem:[#allocation8 + $0x118] sm:$0xff]   ;;  %v3176_v60 = vcombine.low %v4578_v42, %v4584_v3  ;;  %v1617_v7 = vrot.slane %v1615_v21, 4  ;;  %v1620_v8 = vrot.slane %v1618_v1, 5 }
 0x193   : > { %3605 = vmatprep.mubr.bf16.mxu0 %v3174_v50  ;;  %3594 = vmatpush3.bf16.msra.mxu0 %v3861_v10  ;;  %v3154_v10 = vcombine.low %v1585_v29, %v1599_v16  ;;  %v2236_v50 = vshrl.u32 %v2219_v26, 16  ;;  %v1660_v29 = vshll.u32 %v1568_v5, 16  ;;  %v1638_v42 = vshll.u32 %v4550_v2, 16 }
 0x194   : > { %3532 = vmatpush3.bf16.msra.mxu1 %v3859_v23  ;;  %3595 = vmatprep.subr.bf16.mxu0 %v3863_v51  ;;  %v3133_v23 = vcombine.low %v1227_v63, %v1231_v0  ;;  %v2241_v0 = vrot.slane %v2239_v20, 5  ;;  %v1621_v26 = vor.u32 %v1620_v8, %v1617_v7  ;;  %v1652_v3 = vshll.u32 %v4553_v12, 16  ;;  %v3876_v20 = vld [vmem:[#allocation8 + $0x100] sm:$0xff]  }
 0x195   : > { %3565 = vmatprep.subr.bf16.mxu1 %v3862_v14  ;;  %v2238_v63 = vrot.slane %v2236_v50, 4  ;;  %v1659_v50 = vrot.slane %v1657_v28, 4  ;;  %v1662_v61 = vrot.slane %v1660_v29, 5  ;;  %v2259_v21 = vshll.u32 %v4601_v40, 16  ;;  %v3879_v8 = vld [vmem:[#allocation8 + $0x1e0] sm:$0xff]  }
 0x196   : > { %v1622_v53 = vrot.slane %v1621_v26, 4  ;;  %v2229_v29 = vld [vmem:[#allocation2 + $0x38] sm:$0xf] }
 0x197   : > { %3534 = vmatmul.mubr.bf16.vlgmr.msra.gmra.mxu1 %v3131_v55  ;;  %3596 = vmatpush3.bf16.msra.mxu0 %v3863_v51  ;;  %v4587_v51 = vld [vmem:[#allocation2 + $0x44] sm:$0x1]  ;;  %v1629_v55 = vshrl.u32 %v1564_v44, 16  ;;  %v2242_v35 = vor.u32 %v2241_v0, %v2238_v63  ;;  %v2256_v44 = vor.u32 %v2255_v11, %v2252_v9 }
 0x198   : > { %3537 = vmatprep.mubr.bf16.mxu1 %v3132_v31  ;;  %3566 = vmatpush3.bf16.msra.mxu1 %v3862_v14  ;;  %v4572_v14 = vld [vmem:[#allocation2 + $0x3c] sm:$0x1]  ;;  %v3173_v31 = vrot.slane %v4580_v43, 9  ;;  %v1892_v62 = vrot.slane %v4587_v51, 5  ;;  %v3875_v43 = vld [vmem:[#allocation8 + $0x1f0] sm:$0xff]  }
 0x199   : > { %3567 = vmatprep.subr.bf16.mxu1 %v3864_v58  ;;  %3597 = vmatprep.subr.bf16.mxu0 %v3865_v52  ;;  %v1888_v36 = vrot.slane %v4572_v14, 5  ;;  %v1631_v16 = vrot.slane %v1629_v55, 4  ;;  %v2243_v2 = vrot.slane %v2242_v35, 4  ;;  %v3877_v55 = vld [vmem:[#allocation8 + $0x1e8] sm:$0xff]   ;;  %v3880_v11 = vld [vmem:[#allocation8 + $0x1b0] sm:$0xff]  }
 0x19a   : > { %v1893_v12 = vsel %vm4502_vm12, %v3173_v31, %v1892_v62  ;;  %v1612_v62 = vrot.slane %v1610_v38, 5 }
 0x19b   : > { %3598 = vmatpush3.bf16.msra.mxu0 %v3865_v52  ;;  %v1646_v52 = vshll.u32 %v1566_v46, 16  ;;  %v4598_v34 = vsel %vm4502_vm12, %v3172_v48, %v1888_v36  ;;  %v1666_v36 = vshll.u32 %v4572_v14, 16 }
 0x19c   : > { %3568 = vmatpush3.bf16.msra.mxu1 %v3864_v58  ;;  %3599 = vmatprep.subr.bf16.mxu0 %v3867_v17  ;;  %v1643_v58 = vshrl.u32 %v1566_v46, 16  ;;  %v3177_v0 = vcombine.low %v4598_v34, %v1893_v12  ;;  %v2223_v34 = vld [vmem:[#allocation2 + $0x20] sm:$0xf] }
 0x19d   : > { %3569 = vmatprep.subr.bf16.mxu1 %v3866_v19  ;;  %v1648_v22 = vrot.slane %v1646_v52, 5 }
 0x19e   : > { %v1645_v18 = vrot.slane %v1643_v58, 4 }
 0x19f   : > { %3538 = vmatmul.mubr.bf16.gmra.mxu1 %v3133_v23  ;;  %3600 = vmatpush3.bf16.msra.mxu0 %v3867_v17  ;;  %v1634_v17 = vrot.slane %v1632_v57, 5  ;;  %v1603_v23 = vrot.slane %v1601_v59, 4  ;;  %v2257_v57 = vrot.slane %v2256_v44, 4  ;;  %v3878_v59 = vld [vmem:[#allocation8 + $0x1b8] sm:$0xff]   ;;  %v2309_v44 = vshll.u32 %v2229_v29, 16 }
 0x1a0   : > { %3570 = vmatpush3.bf16.msra.mxu1 %v3866_v19  ;;  %3581 = vmatprep.mubr.bf16.mxu1 %v3154_v10  ;;  %v1604_v19 = vshll.u32 %v1560_v49, 16  ;;  %v1671_v10 = vshrl.u32 %v1570_v13, 16  ;;  %v1624_v49 = vshll.u32 %v4541_v47, 16  ;;  %v2247_v47 = vrot.slane %v2245_v41, 5  ;;  %v3882_v41 = vld [vmem:[#allocation8 + $0x1a8] sm:$0xff]  }
 0x1a1   : > { %3571 = vmatprep.subr.bf16.mxu1 %v3868_v30  ;;  %3601 = vmatprep.subr.bf16.mxu0 %v3869_v37  ;;  %v1635_v46 = vor.u32 %v1634_v17, %v1631_v16  ;;  %v1668_v16 = vrot.slane %v1666_v36, 5  ;;  %v2311_v12 = vrot.slane %v2309_v44, 5  ;;  %v4639_v36 = vld [vmem:[#allocation2 + $0x3c] sm:$0x1] }
 0x1a2   : > { %v1606_v27 = vrot.slane %v1604_v19, 5  ;;  %v1673_v1 = vrot.slane %v1671_v10, 4  ;;  %v1626_v52 = vrot.slane %v1624_v49, 5  ;;  %v2248_v31 = vsel %vm4443_vm9, %v2243_v2, %v2247_v47  ;;  %v3883_v47 = vld [vmem:[#allocation2 + $0x10] ss:$8 sps:$4 sm:$0xff]  }
 0x1a3   : > { %3602 = vmatpush3.bf16.msra.mxu0 %v3869_v37  ;;  %v1674_v37 = vshll.u32 %v1570_v13, 16  ;;  %v1636_v32 = vrot.slane %v1635_v46, 4  ;;  %v2261_v19 = vrot.slane %v2259_v21, 5  ;;  %v2233_v46 = vld [vmem:[#allocation2 + $0x48] sm:$0xf] }
 0x1a4   : > { %3572 = vmatpush3.bf16.msra.mxu1 %v3868_v30  ;;  %3603 = vmatprep.subr.bf16.mxu0 %v3871_v54  ;;  %v3874_v30 = vld [vmem:[#allocation8 + $0x108] sm:$0xff]   ;;  %v1607_v48 = vor.u32 %v1606_v27, %v1603_v23  ;;  %v1627_v63 = vsel %vm4443_vm9, %v1622_v53, %v1626_v52  ;;  %v2225_v23 = vld [vmem:[#allocation2 + $0x28] sm:$0xf]  ;;  %v2227_v27 = vld [vmem:[#allocation2 + $0x30] sm:$0xf]  ;;  %v2334_v2 = vshrl.u32 %v2233_v46, 16 }
 0x1a5   : > { %3573 = vmatprep.subr.bf16.mxu1 %v3870_v56  ;;  %v1676_v4 = vrot.slane %v1674_v37, 5  ;;  %v2262_v14 = vsel %vm4443_vm9, %v2257_v57, %v2261_v19  ;;  %v2278_v10 = vshrl.u32 %v2225_v23, 16  ;;  %v2281_v37 = vshll.u32 %v2225_v23, 16  ;;  %v2231_v53 = vld [vmem:[#allocation2 + $0x40] sm:$0xf]  ;;  %v3887_v19 = vld [vmem:[#allocation8 + $0x198] sm:$0xff]  }
 0x1a6   : > { %v1608_v58 = vrot.slane %v1607_v48, 4  ;;  %v3198_v9 = vcombine.low %v2248_v31, %v2262_v14  ;;  %v2292_v38 = vshrl.u32 %v2227_v27, 16  ;;  %v3884_v48 = vld [vmem:[#allocation8 + $0x1d0] sm:$0xff]   ;;  %v2323_v31 = vshll.u32 %v2231_v53, 16  ;;  %v3888_v14 = vld [vmem:[#allocation8 + $0x1c0] sm:$0xff]  }
 0x1a7   : > { %3604 = vmatpush3.bf16.msra.mxu0 %v3871_v54  ;;  %v1640_v54 = vrot.slane %v1638_v42, 5  ;;  %v2295_v42 = vshll.u32 %v2227_v27, 16 }
 0x1a8   : > { %3574 = vmatpush3.bf16.msra.mxu1 %v3870_v56  ;;  %3637 = vmatprep.subr.bf16.mxu0 %v3873_v6  ;;  %v1649_v56 = vor.u32 %v1648_v22, %v1645_v18  ;;  %v2294_v21 = vrot.slane %v2292_v38, 4 }
 0x1a9   : > { %3575 = vmatprep.subr.bf16.mxu1 %v3872_v25  ;;  %v1641_v5 = vsel %vm4443_vm9, %v1636_v32, %v1640_v54  ;;  %v3886_v54 = vld [vmem:[#allocation8 + $0x1c8] sm:$0xff]   ;;  %v2337_v32 = vshll.u32 %v2233_v46, 16 }
 0x1aa   : > { %3606 = vmatmul.mubr.bf16.vlgmr.msra.gmra.mxu0 %v3175_v39  ;;  %v1650_v45 = vrot.slane %v1649_v56, 4  ;;  %v1654_v39 = vrot.slane %v1652_v3, 5  ;;  %v2264_v56 = vshrl.u32 %v2223_v34, 16  ;;  %v2267_v3 = vshll.u32 %v2223_v34, 16 }
 0x1ab   : > { %3609 = vmatprep.mubr.bf16.mxu0 %v3176_v60  ;;  %3638 = vmatpush3.bf16.msra.mxu0 %v3873_v6  ;;  %v1677_v6 = vor.u32 %v1676_v4, %v1673_v1  ;;  %v1680_v60 = vshll.u32 %v4587_v51, 16  ;;  %v1613_v51 = vsel %vm4443_vm9, %v1608_v58, %v1612_v62  ;;  %v2297_v1 = vrot.slane %v2295_v42, 5  ;;  %v4636_v58 = vld [vmem:[#allocation2 + $0x34] sm:$0x1] }
 0x1ac   : > { %3576 = vmatpush3.bf16.msra.mxu1 %v3872_v25  ;;  %3639 = vmatprep.subr.bf16.mxu0 %v3875_v43  ;;  %v1663_v25 = vor.u32 %v1662_v61, %v1659_v50  ;;  %v1655_v7 = vsel %vm4443_vm9, %v1650_v45, %v1654_v39  ;;  %v3155_v17 = vcombine.low %v1613_v51, %v1627_v63  ;;  %v3885_v50 = vld [vmem:[#allocation8 + $0x1a0] sm:$0xff]   ;;  %v2280_v61 = vrot.slane %v2278_v10, 4  ;;  %v4632_v45 = vld [vmem:[#allocation2 + $0x24] sm:$0x1]  ;;  %v4634_v39 = vld [vmem:[#allocation2 + $0x2c] sm:$0x1] }
 0x1ad   : > { %3577 = vmatprep.subr.bf16.mxu1 %v3874_v30  ;;  %v1678_v18 = vrot.slane %v1677_v6, 4  ;;  %v1682_v22 = vrot.slane %v1680_v60, 5  ;;  %v3156_v28 = vcombine.low %v1641_v5, %v1655_v7  ;;  %v2269_v57 = vrot.slane %v2267_v3, 5 }
 0x1ae   : > { %v1664_v13 = vrot.slane %v1663_v25, 4  ;;  %v2287_v25 = vshll.u32 %v4634_v39, 16  ;;  %v2298_v6 = vor.u32 %v2297_v1, %v2294_v21  ;;  %v2301_v60 = vshll.u32 %v4636_v58, 16  ;;  %v2501_v1 = vld [vmem:[#allocation2 + $0x10] sm:$0xe] }
 0x1af   : > { %3640 = vmatpush3.bf16.msra.mxu0 %v3875_v43  ;;  %v1683_v26 = vsel %vm4443_vm9, %v1678_v18, %v1682_v22  ;;  %v2306_v43 = vshrl.u32 %v2229_v29, 16  ;;  %v2315_v63 = vshll.u32 %v4639_v36, 16  ;;  %v2273_v5 = vshll.u32 %v4632_v45, 16  ;;  %v4646_v29 = vld [vmem:[#allocation2 + $0x44] sm:$0x1] }
 0x1b0   : > { %3578 = vmatpush3.bf16.msra.mxu1 %v3874_v30  ;;  %3641 = vmatprep.subr.bf16.mxu0 %v3877_v55  ;;  %v3881_v30 = vld [vmem:[#allocation8 + $0x1d8] sm:$0xff]   ;;  %v1669_v35 = vsel %vm4443_vm9, %v1664_v13, %v1668_v16  ;;  %v2336_v7 = vrot.slane %v2334_v2, 4  ;;  %v2325_v13 = vrot.slane %v2323_v31, 5  ;;  %v3889_v16 = vld [vmem:[#allocation8 + $0x190] sm:$0xff]   ;;  %v2303_v18 = vrot.slane %v2301_v60, 5  ;;  %v3898_v31 = vld [vmem:[#allocation8 + $0x220] sm:$0xff]  }
 0x1b1   : > { %3579 = vmatprep.subr.bf16.mxu1 %v3876_v20  ;;  %v3157_v49 = vcombine.low %v1669_v35, %v1683_v26  ;;  %v2308_v4 = vrot.slane %v2306_v43, 4  ;;  %v2317_v23 = vrot.slane %v2315_v63, 5  ;;  %v2275_v35 = vrot.slane %v2273_v5, 5  ;;  %v3890_v26 = vld [vmem:[#allocation8 + $0x188] sm:$0xff]   ;;  %v3893_v2 = vld [vmem:[#allocation8 + $0x238] sm:$0xff]  }
 0x1b2   : > { %3610 = vmatmul.mubr.bf16.gmra.mxu0 %v3177_v0  ;;  %v2329_v38 = vshll.u32 %v4646_v29, 16  ;;  %v2504_v60 = vld [vmem:[#allocation2 + $0x28] sm:$0xe]  ;;  %v2506_v63 = vld [vmem:[#allocation2 + $0x38] sm:$0xe] }
 0x1b3   : > { %3642 = vmatpush3.bf16.msra.mxu0 %v3877_v55  ;;  %3653 = vmatprep.mubr.bf16.mxu0 %v3198_v9  ;;  %v2266_v55 = vrot.slane %v2264_v56, 4  ;;  %v2312_v62 = vor.u32 %v2311_v12, %v2308_v4  ;;  %v2289_v9 = vrot.slane %v2287_v25, 5  ;;  %v3892_v4 = vld [vmem:[#allocation2 + $0x20] ss:$8 sps:$4 sm:$0xff]   ;;  %v3213_v5 = vrot.slane %v2504_v60, 9 }
 0x1b4   : > { %3580 = vmatpush3.bf16.msra.mxu1 %v3876_v20  ;;  %3643 = vmatprep.subr.bf16.mxu0 %v3879_v8  ;;  %v2283_v20 = vrot.slane %v2281_v37, 5  ;;  %v3895_v12 = vld [vmem:[#allocation8 + $0x230] sm:$0xff]  }
 0x1b5   : > { %3613 = vmatprep.subr.bf16.mxu1 %v3878_v59  ;;  %v2270_v0 = vor.u32 %v2269_v57, %v2266_v55  ;;  %v2313_v22 = vrot.slane %v2312_v62, 4  ;;  %v2527_v55 = vrot.slane %v4594_v15, 5  ;;  %v3896_v25 = vld [vmem:[#allocation2 + $0x40] ss:$8 sps:$4 sm:$0xff]   ;;  %v2505_v62 = vld [vmem:[#allocation2 + $0x30] sm:$0xe] }
 0x1b6   : > { %v2284_v52 = vor.u32 %v2283_v20, %v2280_v61  ;;  %v3899_v15 = vld [vmem:[#allocation8 + $0x218] sm:$0xff]  }
 0x1b7   : > { %3582 = vmatmul.mubr.bf16.vlgmr.msra.gmra.mxu1 %v3155_v17  ;;  %3644 = vmatpush3.bf16.msra.mxu0 %v3879_v8  ;;  %v2339_v8 = vrot.slane %v2337_v32, 5  ;;  %v2299_v17 = vrot.slane %v2298_v6, 4  ;;  %v2271_v27 = vrot.slane %v2270_v0, 4  ;;  %v2318_v42 = vsel %vm4443_vm9, %v2313_v22, %v2317_v23  ;;  %v3900_v6 = vld [vmem:[#allocation8 + $0x210] sm:$0xff]   ;;  %v3902_v0 = vld [vmem:[#allocation8 + $0x200] sm:$0xff]  }
 0x1b8   : > { %3585 = vmatprep.mubr.bf16.mxu1 %v3156_v28  ;;  %3614 = vmatpush3.bf16.msra.mxu1 %v3878_v59  ;;  %v2320_v59 = vshrl.u32 %v2231_v53, 16  ;;  %v2285_v51 = vrot.slane %v2284_v52, 4  ;;  %v4644_v28 = vld [vmem:[#allocation2 + $0x4c] sm:$0x1]  ;;  %v3894_v53 = vld [vmem:[#allocation2 + $0x30] ss:$8 sps:$4 sm:$0xff]  }
 0x1b9   : > { %3615 = vmatprep.subr.bf16.mxu1 %v3880_v11  ;;  %3645 = vmatprep.subr.bf16.mxu0 %v3881_v30  ;;  %v2343_v34 = vshll.u32 %v4644_v28, 16  ;;  %v2276_v43 = vsel %vm4443_vm9, %v2271_v27, %v2275_v35  ;;  %v2531_v32 = vrot.slane %v4601_v40, 5  ;;  %v3901_v40 = vld [vmem:[#allocation8 + $0x208] sm:$0xff]   ;;  %v2507_v23 = vld [vmem:[#allocation2 + $0x40] sm:$0xe]  ;;  %v2555_v35 = vrot.slane %v4644_v28, 5 }
 0x1ba   : > { %v2290_v10 = vsel %vm4443_vm9, %v2285_v51, %v2289_v9  ;;  %v2543_v51 = vrot.slane %v4636_v58, 5  ;;  %v3215_v9 = vrot.slane %v2506_v63, 9  ;;  %v3906_v28 = vld [vmem:[#allocation9 + $0x20] sm:$0xff]  }
 0x1bb   : > { %3646 = vmatpush3.bf16.msra.mxu0 %v3881_v30  ;;  %v2340_v30 = vor.u32 %v2339_v8, %v2336_v7  ;;  %v3199_v44 = vcombine.low %v2276_v43, %v2290_v10  ;;  %v2539_v7 = vrot.slane %v4634_v39, 5  ;;  %v3214_v8 = vrot.slane %v2505_v62, 9  ;;  %v3908_v43 = vld [vmem:[#allocation9 + $0x10] sm:$0xff]  }
 0x1bc   : > { %3616 = vmatpush3.bf16.msra.mxu1 %v3880_v11  ;;  %3647 = vmatprep.subr.bf16.mxu0 %v3884_v48  ;;  %v2322_v11 = vrot.slane %v2320_v59, 4 }
 0x1bd   : > { %3617 = vmatprep.subr.bf16.mxu1 %v3882_v41  ;;  %v2341_v46 = vrot.slane %v2340_v30, 4  ;;  %v2544_v22 = vsel %vm4502_vm12, %v3214_v8, %v2543_v51 }
 0x1be   : > { %v2326_v37 = vor.u32 %v2325_v13, %v2322_v11  ;;  %v2547_v11 = vrot.slane %v4639_v36, 5 }
 0x1bf   : > { %3586 = vmatmul.mubr.bf16.gmra.mxu1 %v3157_v49  ;;  %3648 = vmatpush3.bf16.msra.mxu0 %v3884_v48  ;;  %v2331_v48 = vrot.slane %v2329_v38, 5  ;;  %v2345_v49 = vrot.slane %v2343_v34, 5  ;;  %v2551_v34 = vrot.slane %v4646_v29, 5  ;;  %v3905_v29 = vld [vmem:[#allocation9 + $0x28] sm:$0xff]  }
 0x1c0   : > { %3618 = vmatpush3.bf16.msra.mxu1 %v3882_v41  ;;  %3629 = vmatprep.mubr.bf16.mxu1 %v3883_v47  ;;  %v2304_v41 = vsel %vm4443_vm9, %v2299_v17, %v2303_v18  ;;  %v2327_v3 = vrot.slane %v2326_v37, 4  ;;  %v2502_v47 = vld [vmem:[#allocation2 + $0x18] sm:$0xe]  ;;  %v2540_v17 = vsel %vm4502_vm12, %v3213_v5, %v2539_v7  ;;  %v2508_v18 = vld [vmem:[#allocation2 + $0x48] sm:$0xe]  ;;  %v2548_v39 = vsel %vm4502_vm12, %v3215_v9, %v2547_v11 }
 0x1c1   : > { %3619 = vmatprep.subr.bf16.mxu1 %v3885_v50  ;;  %3649 = vmatprep.subr.bf16.mxu0 %v3886_v54  ;;  %v3200_v56 = vcombine.low %v2304_v41, %v2318_v42  ;;  %v2346_v20 = vsel %vm4443_vm9, %v2341_v46, %v2345_v49  ;;  %v3211_v57 = vrot.slane %v2502_v47, 9  ;;  %v3217_v27 = vrot.slane %v2508_v18, 9  ;;  %v3904_v41 = vld [vmem:[#allocation9 + $0x30] sm:$0xff]   ;;  %v3909_v46 = vld [vmem:[#allocation9 + $0x8] sm:$0xff]  }
 0x1c2   : > { %v2332_v61 = vsel %vm4443_vm9, %v2327_v3, %v2331_v48  ;;  %v3220_v30 = vcombine.low %v2544_v22, %v2548_v39  ;;  %v3910_v3 = vld [vmem:[#allocation9] sm:$0xff]  }
 0x1c3   : > { %3650 = vmatpush3.bf16.msra.mxu0 %v3886_v54  ;;  %v3201_v21 = vcombine.low %v2332_v61, %v2346_v20  ;;  %v3210_v54 = vrot.slane %v2501_v1, 9  ;;  %v2532_v59 = vsel %vm4502_vm12, %v3211_v57, %v2531_v32  ;;  %v2556_v37 = vsel %vm4502_vm12, %v3217_v27, %v2555_v35 }
 0x1c4   : > { %3620 = vmatpush3.bf16.msra.mxu1 %v3885_v50  ;;  %3651 = vmatprep.subr.bf16.mxu0 %v3888_v14  ;;  %v3891_v50 = vld [vmem:[#allocation8 + $0x180] sm:$0xff]  }
 0x1c5   : > { %3621 = vmatprep.subr.bf16.mxu1 %v3887_v19  ;;  %v2528_v52 = vsel %vm4502_vm12, %v3210_v54, %v2527_v55 }
 0x1c7   : > { %3652 = vmatpush3.bf16.msra.mxu0 %v3888_v14  ;;  %v2503_v14 = vld [vmem:[#allocation2 + $0x20] sm:$0xe] }
 0x1c8   : > { %3622 = vmatpush3.bf16.msra.mxu1 %v3887_v19  ;;  %v3218_v19 = vcombine.low %v2528_v52, %v2532_v59  ;;  %v3212_v13 = vrot.slane %v2503_v14, 9 }
 0x1c9   : > { %3623 = vmatprep.subr.bf16.mxu1 %v3889_v16 }
 0x1ca   : > { %3654 = vmatmul.mubr.bf16.vlgmr.msra.gmra.mxu0 %v3199_v44 }
 0x1cb   : > { %3657 = vmatprep.mubr.bf16.mxu0 %v3200_v56 }
 0x1cc   : > { %3624 = vmatpush3.bf16.msra.mxu1 %v3889_v16  ;;  %v2535_v16 = vrot.slane %v4632_v45, 5  ;;  %v3216_v45 = vrot.slane %v2507_v23, 9 }
 0x1cd   : > { %3625 = vmatprep.subr.bf16.mxu1 %v3890_v26 }
 0x1ce   : > { %v2536_v58 = vsel %vm4502_vm12, %v3212_v13, %v2535_v16  ;;  %v2552_v10 = vsel %vm4502_vm12, %v3216_v45, %v2551_v34 }
 0x1cf   : > { %v3219_v36 = vcombine.low %v2536_v58, %v2540_v17  ;;  %v3221_v38 = vcombine.low %v2552_v10, %v2556_v37 }
 0x1d0   : > { %3626 = vmatpush3.bf16.msra.mxu1 %v3890_v26  ;;  %v3903_v26 = vld [vmem:[#allocation9 + $0x38] sm:$0xff]  }
 0x1d1   : > { %3627 = vmatprep.subr.bf16.mxu1 %v3891_v50  ;;  %3685 = vmatprep.subr.bf16.mxu0 %v3903_v26 }
 0x1d2   : > { %3658 = vmatmul.mubr.bf16.gmra.mxu0 %v3201_v21 }
 0x1d3   : > { %3686 = vmatpush3.bf16.msra.mxu0 %v3903_v26 }
 0x1d4   : > { %3628 = vmatpush3.bf16.msra.mxu1 %v3891_v50  ;;  %3687 = vmatprep.subr.bf16.mxu0 %v3904_v41 }
 0x1d5   : > { %3661 = vmatprep.subr.bf16.mxu1 %v3893_v2 }
 0x1d7   : > { %3630 = vmatmul.mubr.bf16.vlgmr.msra.gmra.mxu1 %v3892_v4  ;;  %3688 = vmatpush3.bf16.msra.mxu0 %v3904_v41 }
 0x1d8   : > { %3633 = vmatprep.mubr.bf16.mxu1 %v3894_v53  ;;  %3662 = vmatpush3.bf16.msra.mxu1 %v3893_v2 }
 0x1d9   : > { %3663 = vmatprep.subr.bf16.mxu1 %v3895_v12  ;;  %3689 = vmatprep.subr.bf16.mxu0 %v3905_v29 }
 0x1db   : > { %3690 = vmatpush3.bf16.msra.mxu0 %v3905_v29 }
 0x1dc   : > { %3664 = vmatpush3.bf16.msra.mxu1 %v3895_v12  ;;  %3691 = vmatprep.subr.bf16.mxu0 %v3906_v28 }
 0x1dd   : > { %3665 = vmatprep.subr.bf16.mxu1 %v3897_v24 }
 0x1df   : > { %3634 = vmatmul.mubr.bf16.gmra.mxu1 %v3896_v25  ;;  %3692 = vmatpush3.bf16.msra.mxu0 %v3906_v28 }
 0x1e0   : > { %3666 = vmatpush3.bf16.msra.mxu1 %v3897_v24  ;;  %3677 = vmatprep.mubr.bf16.mxu1 %v3218_v19 }
 0x1e1   : > { %3667 = vmatprep.subr.bf16.mxu1 %v3898_v31  ;;  %3693 = vmatprep.subr.bf16.mxu0 %v3907_v33 }
 0x1e3   : > { %3694 = vmatpush3.bf16.msra.mxu0 %v3907_v33 }
 0x1e4   : > { %3668 = vmatpush3.bf16.msra.mxu1 %v3898_v31  ;;  %3695 = vmatprep.subr.bf16.mxu0 %v3908_v43 }
 0x1e5   : > { %3669 = vmatprep.subr.bf16.mxu1 %v3899_v15 }
 0x1e7   : > { %3696 = vmatpush3.bf16.msra.mxu0 %v3908_v43 }
 0x1e8   : > { %3670 = vmatpush3.bf16.msra.mxu1 %v3899_v15  ;;  %3697 = vmatprep.subr.bf16.mxu0 %v3909_v46 }
 0x1e9   : > { %3671 = vmatprep.subr.bf16.mxu1 %v3900_v6 }
 0x1eb   : > { %3698 = vmatpush3.bf16.msra.mxu0 %v3909_v46 }
 0x1ec   : > { %3672 = vmatpush3.bf16.msra.mxu1 %v3900_v6  ;;  %3699 = vmatprep.subr.bf16.mxu0 %v3910_v3 }
 0x1ed   : > { %3673 = vmatprep.subr.bf16.mxu1 %v3901_v40 }
 0x1ef   : > { %3700 = vmatpush3.bf16.msra.mxu0 %v3910_v3 }
 0x1f0   : > { %3674 = vmatpush3.bf16.msra.mxu1 %v3901_v40 }
 0x1f1   : > { %3675 = vmatprep.subr.bf16.mxu1 %v3902_v0 }
 0x1f4   : > { %3676 = vmatpush3.bf16.msra.mxu1 %v3902_v0 }
 0x1f5   : > { %3709 = vmatprep.subr.bf16.mxu1 %v3903_v26 }
 0x1f7   : > { %3678 = vmatmul.mubr.bf16.vlgmr.msra.gmra.mxu1 %v3219_v36 }
 0x1f8   : > { %3681 = vmatprep.mubr.bf16.mxu1 %v3220_v30  ;;  %3717 = vmatpush3.bf16.msra.mxu1 %v3903_v26 }
 0x1f9   : > { %3710 = vmatprep.subr.bf16.mxu1 %v3904_v41 }
 0x1fc   : > { %3718 = vmatpush3.bf16.msra.mxu1 %v3904_v41 }
 0x1fd   : > { %3711 = vmatprep.subr.bf16.mxu1 %v3905_v29 }
 0x1ff   : > { %3682 = vmatmul.mubr.bf16.gmra.mxu1 %v3221_v38 }
 0x200   : > { %3719 = vmatpush3.bf16.msra.mxu1 %v3905_v29 }
 0x201   : > { %3712 = vmatprep.subr.bf16.mxu1 %v3906_v28 }
 0x204   : > { %3720 = vmatpush3.bf16.msra.mxu1 %v3906_v28 }
 0x205   : > { %3713 = vmatprep.subr.bf16.mxu1 %v3907_v33 }
 0x208   : > { %3721 = vmatpush3.bf16.msra.mxu1 %v3907_v33 }
 0x209   : > { %3714 = vmatprep.subr.bf16.mxu1 %v3908_v43 }
 0x20c   : > { %3722 = vmatpush3.bf16.msra.mxu1 %v3908_v43 }
 0x20d   : > { %3715 = vmatprep.subr.bf16.mxu1 %v3909_v46 }
 0x210   : > { %3723 = vmatpush3.bf16.msra.mxu1 %v3909_v46 }
 0x211   : > { %3716 = vmatprep.subr.bf16.mxu1 %v3910_v3 }
 0x214   : > { %3724 = vmatpush3.bf16.msra.mxu1 %v3910_v3 }
 0x22a   : > { %v3511_v49 = vpop.f32.mrf.mxu0 }
 0x22c   : > { %v1142_v61 = vpop.f32.mrf.mxu0 }
 0x22e   : > { %v3512_v2 = vpop.f32.mrf.mxu0 }
 0x230   : > { %v1145_v1 = vpop.f32.mrf.mxu0 }
 0x234   : > { %v3515_v12 = vpop.f32.mrf.mxu0 }
 0x236   : > { %v1158_v47 = vpop.f32.mrf.mxu0 }
 0x237   : > { %v4686_v42 = vpop.f32.mrf.mxu1 }
 0x238   : > { %v3516_v55 = vpop.f32.mrf.mxu0  ;;  %v1151_v10 = vadd.f32 %v3511_v49, %v4686_v42 }
 0x239   : > { %v4688_v44 = vpop.f32.mrf.mxu1 }
 0x23a   : > { %v1161_v57 = vpop.f32.mrf.mxu0  ;;  %v1143_v35 = vadd.f32 %v1142_v61, %v4688_v44 }
 0x23b   : > { %v3488_v56 = vpop.f32.mrf.mxu1 }
 0x23c   : > { %v1154_v38 = vadd.f32 %v3512_v2, %v3488_v56 }
 0x23d   : > { %v1008_v48 = vpop.f32.mrf.mxu1 }
 0x23e   : > { %v1146_v28 = vadd.f32 %v1145_v1, %v1008_v48 }
 0x23f   : > { %v4690_v50 = vpop.f32.mrf.mxu1 }
 0x240   : > { %v1167_v44 = vadd.f32 %v3515_v12, %v4690_v50 }
 0x241   : > { %v1021_v20 = vpop.f32.mrf.mxu1 }
 0x243   : > { %v4692_v21 = vpop.f32.mrf.mxu1 }
 0x244   : > { %4811 = vst [vmem:[#allocation16_spill] sm:$0xff] %v4692_v21 }
 0x245   : > { %v4694_v4 = vpop.f32.mrf.mxu1 }
 0x246   : > { %4812 = vst [vmem:[#allocation17_spill] sm:$0xff] %v4694_v4  ;;  %v1159_v4 = vadd.f32 %v1158_v47, %v1021_v20 }
 0x24a   : > { %v3559_v52 = vpop.f32.mrf.mxu0 }
 0x24b   : > { %v4816_v49 = vld [vmem:[#allocation16_spill] sm:$0xff] }
 0x24c   : > { %v1517_v59 = vpop.f32.mrf.mxu0  ;;  %v1170_v2 = vadd.f32 %v3516_v55, %v4816_v49 }
 0x24e   : > { %v3560_v19 = vpop.f32.mrf.mxu0 }
 0x250   : > { %v1520_v6 = vpop.f32.mrf.mxu0 }
 0x252   : > { %v3563_v60 = vpop.f32.mrf.mxu0 }
 0x254   : > { %v1533_v63 = vpop.f32.mrf.mxu0 }
 0x256   : > { %v3564_v14 = vpop.f32.mrf.mxu0 }
 0x257   : > { %v3535_v53 = vpop.f32.mrf.mxu1 }
 0x258   : > { %v1536_v7 = vpop.f32.mrf.mxu0  ;;  %v1380_v41 = vadd.f32 %v3535_v53, %v1151_v10 }
 0x259   : > { %v1347_v54 = vpop.f32.mrf.mxu1 }
 0x25a   : > { %v1378_v26 = vadd.f32 %v1347_v54, %v1143_v35  ;;  %v4817_v35 = vld [vmem:[#allocation17_spill] sm:$0xff] }
 0x25b   : > { %v3536_v24 = vpop.f32.mrf.mxu1  ;;  %v1162_v48 = vadd.f32 %v1161_v57, %v4817_v35 }
 0x25c   : > { %v1381_v33 = vadd.f32 %v3536_v24, %v1154_v38  ;;  %v1548_v3 = vadd.f32 %v1517_v59, %v1378_v26 }
 0x25d   : > { %v1350_v32 = vpop.f32.mrf.mxu1 }
 0x25e   : > { %v1379_v46 = vadd.f32 %v1350_v32, %v1146_v28 }
 0x25f   : > { %v3539_v25 = vpop.f32.mrf.mxu1 }
 0x260   : > { %v1549_v53 = vadd.f32 %v1520_v6, %v1379_v46  ;;  %v1384_v1 = vadd.f32 %v3539_v25, %v1167_v44 }
 0x261   : > { %v1363_v31 = vpop.f32.mrf.mxu1 }
 0x262   : > { %v1382_v56 = vadd.f32 %v1363_v31, %v1159_v4  ;;  %v1554_v12 = vadd.f32 %v3563_v60, %v1384_v1 }
 0x263   : > { %v3540_v15 = vpop.f32.mrf.mxu1 }
 0x264   : > { %v1385_v32 = vadd.f32 %v3540_v15, %v1170_v2 }
 0x265   : > { %v1366_v40 = vpop.f32.mrf.mxu1 }
 0x266   : > { %v1383_v10 = vadd.f32 %v1366_v40, %v1162_v48  ;;  %v1555_v4 = vadd.f32 %v3564_v14, %v1385_v32 }
 0x268   : > { %v1553_v57 = vadd.f32 %v1536_v7, %v1383_v10  ;;  %v3230_v7 = vld [vmem:[%s4775_s4] ss:$0 sm:$0xff] }
 0x26a   : > { %v3607_v51 = vpop.f32.mrf.mxu0 }
 0x26c   : > { %v2009_v11 = vpop.f32.mrf.mxu0 }
 0x26e   : > { %v3608_v16 = vpop.f32.mrf.mxu0 }
 0x270   : > { %v2012_v18 = vpop.f32.mrf.mxu0 }
 0x272   : > { %v4696_v39 = vpop.f32.mrf.mxu0 }
 0x273   : > { %4813 = vst [vmem:[#allocation18_spill] sm:$0xff] %v4696_v39  ;;  %v1550_v39 = vadd.f32 %v3559_v52, %v1380_v41 }
 0x274   : > { %v2025_v58 = vpop.f32.mrf.mxu0 }
 0x276   : > { %v4698_v27 = vpop.f32.mrf.mxu0 }
 0x277   : > { %v3583_v62 = vpop.f32.mrf.mxu1  ;;  %4814 = vst [vmem:[#allocation19_spill] sm:$0xff] %v4698_v27 }
 0x278   : > { %v4700_v45 = vpop.f32.mrf.mxu0  ;;  %v1832_v61 = vadd.f32 %v3583_v62, %v1550_v39 }
 0x279   : > { %v1799_v0 = vpop.f32.mrf.mxu1  ;;  %4815 = vst [vmem:[#allocation20_spill] sm:$0xff] %v4700_v45  ;;  %v1551_v45 = vadd.f32 %v3560_v19, %v1381_v33  ;;  %v1552_v19 = vadd.f32 %v1533_v63, %v1382_v56 }
 0x27a   : > { %v1830_v21 = vadd.f32 %v1799_v0, %v1548_v3  ;;  %v2042_v47 = vadd.f32 %v3607_v51, %v1832_v61 }
 0x27b   : > { %v3584_v5 = vpop.f32.mrf.mxu1 }
 0x27c   : > { %v1833_v54 = vadd.f32 %v3584_v5, %v1551_v45  ;;  %v2040_v52 = vadd.f32 %v2009_v11, %v1830_v21 }
 0x27d   : > { %v1802_v8 = vpop.f32.mrf.mxu1 }
 0x27e   : > { %v1831_v59 = vadd.f32 %v1802_v8, %v1549_v53  ;;  %v2043_v50 = vadd.f32 %v3608_v16, %v1833_v54 }
 0x27f   : > { %v3587_v9 = vpop.f32.mrf.mxu1 }
 0x280   : > { %v2041_v6 = vadd.f32 %v2012_v18, %v1831_v59  ;;  %v1836_v5 = vadd.f32 %v3587_v9, %v1554_v12  ;;  %v4819_v18 = vld [vmem:[#allocation19_spill] sm:$0xff] }
 0x281   : > { %v1815_v13 = vpop.f32.mrf.mxu1 }
 0x282   : > { %v1834_v55 = vadd.f32 %v1815_v13, %v1552_v19 }
 0x283   : > { %v3588_v17 = vpop.f32.mrf.mxu1 }
 0x284   : > { %v1837_v15 = vadd.f32 %v3588_v17, %v1555_v4  ;;  %v2044_v63 = vadd.f32 %v2025_v58, %v1834_v55 }
 0x285   : > { %v1818_v22 = vpop.f32.mrf.mxu1 }
 0x286   : > { %v1835_v40 = vadd.f32 %v1818_v22, %v1553_v57  ;;  %v2047_v9 = vadd.f32 %v4819_v18, %v1837_v15  ;;  %v3307_v57 = vld [vmem:[%s4294_s12 + $0x8] sm:$0xff]   ;;  %v3272_v15 = vld [vmem:[%s4294_s12] sm:$0xff]  }
 0x28a   : > { %v3655_v37 = vpop.f32.mrf.mxu0 }
 0x28c   : > { %v2462_v43 = vpop.f32.mrf.mxu0 }
 0x28e   : > { %v3656_v42 = vpop.f32.mrf.mxu0 }
 0x290   : > { %v2465_v20 = vpop.f32.mrf.mxu0 }
 0x292   : > { %v3659_v25 = vpop.f32.mrf.mxu0 }
 0x294   : > { %v2478_v60 = vpop.f32.mrf.mxu0 }
 0x296   : > { %v3660_v46 = vpop.f32.mrf.mxu0 }
 0x297   : > { %v3631_v23 = vpop.f32.mrf.mxu1 }
 0x298   : > { %v2213_v62 = vadd.f32 %v3631_v23, %v2042_v47  ;;  %v4818_v23 = vld [vmem:[#allocation18_spill] sm:$0xff]  ;;  %v2481_v48 = vpop.f32.mrf.mxu0 }
 0x299   : > { %v2180_v36 = vpop.f32.mrf.mxu1  ;;  %v2046_v38 = vadd.f32 %v4818_v23, %v1836_v5  ;;  %v3274_v23 = vunpack.c.h.bf16 %v3272_v15 }
 0x29a   : > { %v2211_v0 = vadd.f32 %v2180_v36, %v2040_v52  ;;  %v2495_v11 = vadd.f32 %v3655_v37, %v2213_v62  ;;  %v4820_v37 = vld [vmem:[#allocation20_spill] sm:$0xff] }
 0x29b   : > { %v3632_v30 = vpop.f32.mrf.mxu1  ;;  %v2045_v26 = vadd.f32 %v4820_v37, %v1835_v40 }
 0x29c   : > { %v2214_v31 = vadd.f32 %v3632_v30, %v2043_v50  ;;  %v2493_v21 = vadd.f32 %v2462_v43, %v2211_v0 }
 0x29d   : > { %v2183_v34 = vpop.f32.mrf.mxu1 }
 0x29e   : > { %v2212_v8 = vadd.f32 %v2183_v34, %v2041_v6  ;;  %v2496_v16 = vadd.f32 %v3656_v42, %v2214_v31 }
 0x29f   : > { %v3635_v29 = vpop.f32.mrf.mxu1 }
 0x2a0   : > { %v2494_v34 = vadd.f32 %v2465_v20, %v2212_v8  ;;  %v2217_v22 = vadd.f32 %v3635_v29, %v2046_v38  ;;  %v3277_v8 = vunpack.c.l.bf16 %v3307_v57  ;;  %v3309_v38 = vld [vmem:[%s4294_s12 + $0x18] sm:$0xff]  }
 0x2a1   : > { %v2196_v27 = vpop.f32.mrf.mxu1 }
 0x2a2   : > { %v2215_v30 = vadd.f32 %v2196_v27, %v2044_v63  ;;  %v2499_v2 = vadd.f32 %v3659_v25, %v2217_v22  ;;  %v3231_v25 = vld [vmem:[%s4777_s6] ss:$0 sm:$0xff]  ;;  %v3278_v63 = vunpack.c.h.bf16 %v3307_v57 }
 0x2a3   : > { %v3636_v24 = vpop.f32.mrf.mxu1 }
 0x2a4   : > { %v2218_v41 = vadd.f32 %v3636_v24, %v2047_v9  ;;  %v2497_v42 = vadd.f32 %v2478_v60, %v2215_v30  ;;  %v3308_v9 = vld [vmem:[%s4294_s12 + $0x10] sm:$0xff]   ;;  %s4017_s12 = scalar_lea.vmem %s4723_s21, 512 }
 0x2a5   : > { %v2199_v39 = vpop.f32.mrf.mxu1  ;;  %p4018_p7 = scmp.ne.s32.totalorder %s4723_s21, %s4017_s12  ;;  %p4025_p0 = scmp.lt.s32.totalorder %s4023_s9, %s4017_s12 }
 0x2a6   : > { %v2216_v27 = vadd.f32 %v2199_v39, %v2045_v26  ;;  %v2500_v29 = vadd.f32 %v3660_v46, %v2218_v41 }
 0x2a7   : > { %p4019_p12 = pnand %p4018_p7, %p4821_p1  ;;  %p4026_p2 = por %p4025_p0, %p4024_p13 }
 0x2a8   : > { %v2498_v52 = vadd.f32 %v2481_v48, %v2216_v27 }
 0x2a9   : > { %p4020_p9 = pneg %p4019_p12 }
 0x2ab   : > { %p4027_p10 = pnand %p4026_p2, %p4020_p9 }
 0x2b7   : > { %v3679_v45 = vpop.f32.mrf.mxu1 }
 0x2b8   : > { %v2705_v13 = vadd.f32 %v3679_v45, %v2495_v11  ;;  %v3273_v11 = vunpack.c.l.bf16 %v3272_v15 }
 0x2b9   : > { %v2672_v51 = vpop.f32.mrf.mxu1 }
 0x2ba   : > { %v2703_v36 = vadd.f32 %v2672_v51, %v2493_v21  ;;  %v2720_v3 = vadd.f32 %v3230_v7, %v2705_v13 }
 0x2bb   : > { %v3680_v14 = vpop.f32.mrf.mxu1 }
 0x2bc   : > { %v2706_v17 = vadd.f32 %v3680_v14, %v2496_v16  ;;  %v2718_v28 = vadd.f32 %v3230_v7, %v2703_v36  ;;  %v2728_v1 = vmax.f32 %v2720_v3, 0.0 }
 0x2bd   : > { %v2675_v58 = vpop.f32.mrf.mxu1 }
 0x2be   : > { %v2721_v33 = vadd.f32 %v3230_v7, %v2706_v17  ;;  %v2704_v43 = vadd.f32 %v2675_v58, %v2494_v34  ;;  %v2726_v54 = vmax.f32 %v2718_v28, 0.0  ;;  %v3281_v58 = vunpack.c.l.bf16 %v3308_v9 }
 0x2bf   : > { %v3683_v44 = vpop.f32.mrf.mxu1  ;;  %v3286_v28 = vunpack.c.h.bf16 %v3309_v38 }
 0x2c0   : > { %v2719_v61 = vadd.f32 %v3230_v7, %v2704_v43  ;;  %v2729_v49 = vmax.f32 %v2721_v33, 0.0  ;;  %v2709_v32 = vadd.f32 %v3683_v44, %v2499_v2 }
 0x2c1   : > { %v2688_v56 = vpop.f32.mrf.mxu1 }
 0x2c2   : > { %v2727_v53 = vmax.f32 %v2719_v61, 0.0  ;;  %v2707_v35 = vadd.f32 %v2688_v56, %v2497_v42  ;;  %v2735_v20 = vpack.c.bf16 %v2729_v49, %v2728_v1  ;;  %v2724_v12 = vadd.f32 %v3230_v7, %v2709_v32 }
 0x2c3   : > { %v3684_v24 = vpop.f32.mrf.mxu1  ;;  %v3282_v49 = vunpack.c.h.bf16 %v3308_v9 }
 0x2c4   : > { %v2710_v59 = vadd.f32 %v3684_v24, %v2500_v29  ;;  %v2734_v10 = vpack.c.bf16 %v2727_v53, %v2726_v54  ;;  %v2722_v19 = vadd.f32 %v3230_v7, %v2707_v35  ;;  %v2732_v31 = vmax.f32 %v2724_v12, 0.0 }
 0x2c5   : > { %v2691_v47 = vpop.f32.mrf.mxu1 }
 0x2c6   : > { %v2725_v0 = vadd.f32 %v3230_v7, %v2710_v59  ;;  %v2708_v50 = vadd.f32 %v2691_v47, %v2498_v52  ;;  %3701 = vmatprep.mubr.bf16.mxu0 %v2734_v10  ;;  %v2730_v55 = vmax.f32 %v2722_v19, 0.0 }
 0x2c7   : > { %3702 = vmatmul.mubr.bf16.vlgmr.msra.gmra.mxu0 %v2735_v20 }
 0x2c8   : > { %v2723_v62 = vadd.f32 %v3230_v7, %v2708_v50  ;;  %v2733_v39 = vmax.f32 %v2725_v0, 0.0  ;;  %v3285_v7 = vunpack.c.l.bf16 %v3309_v38 }
 0x2ca   : > { %v2731_v4 = vmax.f32 %v2723_v62, 0.0  ;;  %v2737_v5 = vpack.c.bf16 %v2733_v39, %v2732_v31 }
 0x2cc   : > { %v2736_v6 = vpack.c.bf16 %v2731_v4, %v2730_v55 }
 0x2ce   : > { %3705 = vmatprep.mubr.bf16.mxu1 %v2736_v6 }
 0x2cf   : > { %3706 = vmatmul.mubr.bf16.vlgmr.msra.gmra.mxu1 %v2737_v5 }
 0x387   : > { %v3703_v45 = vpop.f32.mrf.mxu0 }
 0x388   : > { %v2868_v21 = vadd.f32 %v3703_v45, %v3231_v25 }
 0x389   : > { %v2859_v40 = vpop.f32.mrf.mxu0 }
 0x38a   : > { %v2860_v51 = vadd.f32 %v3231_v25, %v2859_v40  ;;  %v2892_v16 = vadd.f32 %v3277_v8, %v2868_v21 }
 0x38b   : > { %v3704_v36 = vpop.f32.mrf.mxu0 }
 0x38c   : > { %v2871_v60 = vadd.f32 %v3704_v36, %v3231_v25  ;;  %v2890_v14 = vadd.f32 %v3273_v11, %v2860_v51  ;;  %v2900_v34 = vmax.f32 %v2892_v16, 0.0 }
 0x38d   : > { %v2862_v13 = vpop.f32.mrf.mxu0 }
 0x38e   : > { %v2893_v30 = vadd.f32 %v3278_v63, %v2871_v60  ;;  %v2863_v18 = vadd.f32 %v3231_v25, %v2862_v13  ;;  %v2898_v33 = vmax.f32 %v2890_v14, 0.0 }
 0x38f   : > { %v3707_v17 = vpop.f32.mrf.mxu1 }
 0x390   : > { %v2901_v22 = vmax.f32 %v2893_v30, 0.0  ;;  %v2891_v37 = vadd.f32 %v3274_v23, %v2863_v18  ;;  %v2884_v26 = vadd.f32 %v3707_v17, %v3231_v25 }
 0x391   : > { %v2875_v41 = vpop.f32.mrf.mxu1 }
 0x392   : > { %v3295_v43 = vpack.c.bf16 %v2901_v22, %v2900_v34  ;;  %v2899_v46 = vmax.f32 %v2891_v37, 0.0  ;;  %v2876_v3 = vadd.f32 %v3231_v25, %v2875_v41  ;;  %v2896_v61 = vadd.f32 %v3285_v7, %v2884_v26 }
 0x393   : > { %v3708_v44 = vpop.f32.mrf.mxu1 }
 0x394   : > { %3310 = vst [vmem:[%s340_s11 + $0x8] sm:$0xff] %v3295_v43   ;;  %v3290_v27 = vpack.c.bf16 %v2899_v46, %v2898_v33  ;;  %v2887_v42 = vadd.f32 %v3708_v44, %v3231_v25  ;;  %v2894_v56 = vadd.f32 %v3281_v58, %v2876_v3  ;;  %v2904_v35 = vmax.f32 %v2896_v61, 0.0 }
 0x395   : > { %v2878_v2 = vpop.f32.mrf.mxu1 }
 0x396   : > { %3291 = vst [vmem:[%s340_s11] sm:$0xff] %v3290_v27   ;;  %v2897_v54 = vadd.f32 %v3286_v28, %v2887_v42  ;;  %v2879_v53 = vadd.f32 %v3231_v25, %v2878_v2  ;;  %v2902_v1 = vmax.f32 %v2894_v56, 0.0 }
 0x398   : > { %v2905_v29 = vmax.f32 %v2897_v54, 0.0  ;;  %v2895_v48 = vadd.f32 %v3282_v49, %v2879_v53 }
 0x39a   : > { %v3305_v32 = vpack.c.bf16 %v2905_v29, %v2904_v35  ;;  %v2903_v24 = vmax.f32 %v2895_v48, 0.0 }
 0x39c   : > { %3312 = vst [vmem:[%s340_s11 + $0x18] sm:$0xff] %v3305_v32   ;;  %v3300_v59 = vpack.c.bf16 %v2903_v24, %v2902_v1 }
 0x39e   : > { %3311 = vst [vmem:[%s340_s11 + $0x10] sm:$0xff] %v3300_v59  }
 0x39f   : > { %4030 = shalt.err (!%p4027_p10)
}
 0x3a0   : > { %s4031_s10 = scalar_lea.hbm %s4728_s1, 512  ;;  %s4035_s29 = scalar_lea.hbm %s4778_s7, 1024 }
 0x3a1   : > { %p4032_p6 = scmp.ne.s32.totalorder %s4728_s1, %s4031_s10  ;;  %p4036_p3 = scmp.lt.s32.totalorder %s4728_s1, %s4778_s7 }
 0x3a2   : > { %p4037_p11 = scmp.lt.s32.totalorder %s4035_s29, %s4031_s10 }
 0x3a3   : > { %p4033_p4 = pnand %p4032_p6, %p4821_p1 }
 0x3a4   : > { %p4038_p5 = por %p4037_p11, %p4036_p3 }
 0x3a5   : > { %p4034_p8 = pneg %p4033_p4 }
 0x3a7   : > { %p4039_p7 = pnand %p4038_p5, %p4034_p8 }
 0x3a9   : > { %4042 = shalt.err (!%p4039_p7)
}
 0x3aa   : > { %s4099_s18 = smov 64   ;;  %s4100_s23 = smov 4  }
 0x3ab   : > { %3739 = dma.vmem_to_hbm [thread:$0]  (%p4821_p1), %s4723_s21, 512, %s4728_s1, %s2947_s16, %s4099_s18, %s4099_s18, %s4100_s23  }
 0x3ac PF: > { %s2975_s12 = sand.u32 1, %s4077_s24   ;;  %p4822_p12 = scmp.ne.s32.totalorder %s4787_s8, 0 }
 0x3ad   : > { %p4823_p9 = scmp.ge.s32.totalorder %s4089_s27, 2  ;;  %s2976_s28 = scalar_lea.sflag [#allocation5], %s2975_s12 }
 0x3af   : > { %p3756_p13 = pnand %p4823_p9, %p4822_p12 }
 0x3b1   : > { %p3757_p0 = pneg %p3756_p13 }
 0x3b3   : > { %4072 = dma.done.wait (%p3757_p0), %s2976_s28, 512  }
 0x3b4   : > { %4074 = vsyncadd (%p3757_p0), %s2976_s28, 4294966784  ;;  %p22_p2 = scmp.ge.s32.totalorder %s4230_s14, 4   ;;  %s4824_s24 = smov %s4081_s25 }
 0x3b5   : > { %s4825_s25 = smov %s4085_s26  ;;  %s4826_s26 = smov %s4240_s17 }
 0x3b6   : > { %s4827_s27 = smov %s4230_s14  ;;  %24 = sbr.rel (!%p22_p2) target bundleno = 9 (0x9), region = 116 }
 0x3bb   :  { %2981 = vsyncpa [#allocation4], 1 }
 0x3bc   :  { %2983 = vsyncpa [#allocation4 + $0x1], 1 }
 0x3bd   :  { %2984 = vsyncpa [#allocation7], 1 }
 0x3be   :  { %2985 = vsyncpa [#allocation10], 1 }
 0x3bf   :  { %2986 = vsyncpa [#allocation5], 1 }
 0x3c0   :  { %2988 = vsyncpa [#allocation5 + $0x1], 1 }

</bundles_post_ra>
